<compile_context>
chip_gen: v6e
topology: v6e:2x2x1
jax: 0.10.0
libtpu: 0.0.40
codegen_flags: <defaults>
</compile_context>

<pallas_src>
import jax
import jax.numpy as jnp
from jax.experimental import pallas as pl
from jax.experimental.pallas import tpu as pltpu

N_EMBD = 256
HIDDEN = 4 * N_EMBD
DROPOUT = 0.2  # unused at inference (identity)


def ffn_kernel(x_ref, w1_ref, b1_ref, w2_ref, b2_ref, o_ref):
    # x_ref:  (tm, C)  f32  (cast to bf16 here; hidden under the MXU)
    # w1_ref: (C, 4C)  bf16     b1_ref: (1, 4C) f32
    # w2_ref: (4C, C)  bf16     b2_ref: (1, C)  f32
    # o_ref:  (tm, C)  out_dtype
    x_bf16 = x_ref[...].astype(jnp.bfloat16)
    h = jnp.dot(x_bf16, w1_ref[...], preferred_element_type=jnp.float32)
    h = jnp.maximum(h + b1_ref[...], 0.0)            # bias + ReLU in f32 (VPU)
    # TODO(synk): for much larger HIDDEN / tm (esp. v5e's single vst slot),
    # chunk the hidden dim here instead of materializing the full f32 h.
    o = jnp.dot(h.astype(jnp.bfloat16), w2_ref[...],
                preferred_element_type=jnp.float32) + b2_ref[...]
    o_ref[...] = o.astype(o_ref.dtype)               # Dropout(eval) == identity


def feed_forward(x, w1, b1, w2, b2, *, tm=512, out_dtype=None):
    """x: (B, T, C). w1: (C, 4C), w2: (4C, C) (ideally bf16 at rest).

    Returns (B, T, C) in out_dtype (defaults to x.dtype, i.e. f32 to match
    the PyTorch module)."""
    B, T, C = x.shape
    H = w1.shape[1]
    assert w1.shape == (C, H) and w2.shape == (H, C)
    M = B * T
    out_dtype = x.dtype if out_dtype is None else out_dtype

    # Row tile: <= tm, multiple of 16 (bf16 sublane packing), and small enough
    # that the grid has >= 2 blocks whenever M allows it (v7x: 2 TCs/chip).
    tm_eff = min(tm, max(16, pl.cdiv(pl.cdiv(M, 2), 16) * 16))
    grid_m = pl.cdiv(M, tm_eff)   # partial last block: Pallas masks the store

    x2d = x.reshape(M, C)         # no pad / no slice-back (rows independent)
    # Weights bf16 at rest; these casts are no-ops when already bf16.
    w1_bf16 = w1 if w1.dtype == jnp.bfloat16 else w1.astype(jnp.bfloat16)
    w2_bf16 = w2 if w2.dtype == jnp.bfloat16 else w2.astype(jnp.bfloat16)
    b1_2d = b1.reshape(1, H).astype(jnp.float32)
    b2_2d = b2.reshape(1, C).astype(jnp.float32)

    cost = pl.CostEstimate(
        flops=4 * M * C * H,                          # two matmuls
        transcendentals=0,
        bytes_accessed=(M * C * x.dtype.itemsize      # x
                        + C * H * 2 + H * C * 2       # W1, W2 (bf16)
                        + H * 4 + C * 4               # biases (f32)
                        + M * C * jnp.dtype(out_dtype).itemsize),  # output
    )

    # NOTE: W1/W2/b1/b2 are grid-invariant; at C=256/H=1024 their resident
    # footprint is ~1 MiB bf16, so single-buffering them (pl.Buffered(1)) is
    # not worth touching here — revisit if n_embd scales and v7x's 32 MiB
    # scoped VMEM gets tight.  Total footprint at tm=512 is ~8 MiB << 32 MiB.
    out2d = pl.pallas_call(
        ffn_kernel,
        out_shape=jax.ShapeDtypeStruct((M, C), out_dtype),
        grid_spec=pltpu.PrefetchScalarGridSpec(
            num_scalar_prefetch=0,
            grid=(grid_m,),
            in_specs=[
                pl.BlockSpec((tm_eff, C), lambda i: (i, 0)),   # x rows
                pl.BlockSpec((C, H), lambda i: (0, 0)),        # W1 (resident)
                pl.BlockSpec((1, H), lambda i: (0, 0)),        # b1
                pl.BlockSpec((H, C), lambda i: (0, 0)),        # W2 (resident)
                pl.BlockSpec((1, C), lambda i: (0, 0)),        # b2
            ],
            out_specs=pl.BlockSpec((tm_eff, C), lambda i: (i, 0)),
        ),
        compiler_params=pltpu.CompilerParams(
            dimension_semantics=("parallel",),
            vmem_limit_bytes=32 * 1024 * 1024,
        ),
        cost_estimate=cost,
    )(x2d, w1_bf16, b1_2d, w2_bf16, b2_2d)

    return out2d.reshape(B, T, C)


def reference_bf16(x, w1, b1, w2, b2):
    """Reference matching the kernel's bf16-operand / f32-accumulate path."""
    xb = x.astype(jnp.bfloat16)
    w1b = w1.astype(jnp.bfloat16)
    w2b = w2.astype(jnp.bfloat16)
    h = jnp.dot(xb, w1b, preferred_element_type=jnp.float32) + b1
    h = jnp.maximum(h, 0.0)
    return jnp.dot(h.astype(jnp.bfloat16), w2b,
                   preferred_element_type=jnp.float32) + b2


if __name__ == "__main__":
    key = jax.random.PRNGKey(0)
    kx, k1, k2, k3, k4 = jax.random.split(key, 5)

    # B*T = 18 rows: not a multiple of the 16-row tile, so this exercises both
    # the >=2-block grid path and the masked partial last block.
    B, T = 2, 9
    x = jax.random.normal(kx, (B, T, N_EMBD), dtype=jnp.float32)

    # Deterministic parameter init (uniform, roughly PyTorch Linear scale).
    lim1 = 1.0 / (N_EMBD ** 0.5)
    lim2 = 1.0 / (HIDDEN ** 0.5)
    w1 = jax.random.uniform(k1, (N_EMBD, HIDDEN), jnp.float32, -lim1, lim1)
    b1 = jax.random.uniform(k2, (HIDDEN,), jnp.float32, -lim1, lim1)
    w2 = jax.random.uniform(k3, (HIDDEN, N_EMBD), jnp.float32, -lim2, lim2)
    b2 = jax.random.uniform(k4, (N_EMBD,), jnp.float32, -lim2, lim2)

    # Cast weights to bf16 ONCE at init (at-rest bf16 weights; no per-call cast).
    w1_q = w1.astype(jnp.bfloat16)
    w2_q = w2.astype(jnp.bfloat16)

    out = feed_forward(x, w1_q, b1, w2_q, b2)
    out = jax.block_until_ready(out)
    assert out.shape == (B, T, N_EMBD)
    assert out.dtype == jnp.float32

    ref = reference_bf16(x.reshape(-1, N_EMBD), w1, b1, w2, b2).reshape(B, T, N_EMBD)
    assert jnp.allclose(out, ref, atol=1e-2, rtol=1e-2), "mismatch vs reference"

    print("KERNEL_OK")
</pallas_src>

<mosaic_0001>
module attributes {stable_mosaic.version = 11 : i64} {
  func.func @ffn_kernel(%arg0: i32, %arg1: memref<16x256xf32, #tpu.memory_space<vmem>>, %arg2: memref<256x1024xbf16, #tpu.memory_space<vmem>>, %arg3: memref<1x1024xf32, #tpu.memory_space<vmem>>, %arg4: memref<1024x256xbf16, #tpu.memory_space<vmem>>, %arg5: memref<1x256xf32, #tpu.memory_space<vmem>>, %arg6: memref<16x256xf32, #tpu.memory_space<vmem>>) attributes {dimension_semantics = [#tpu.dimension_semantics<parallel>], iteration_bounds = array<i64: 2>, scalar_prefetch = 0 : i64, scratch_operands = 0 : i64, tpu.core_type = #tpu.core_type<tc>, window_params = [{transform_indices = @transform_0, window_bounds = array<i64: 16, 256>}, {pipeline_mode = #tpu.pipeline_mode<synchronous>, transform_indices = @transform_1, window_bounds = array<i64: 256, 1024>}, {pipeline_mode = #tpu.pipeline_mode<synchronous>, transform_indices = @transform_2, window_bounds = array<i64: 1, 1024>}, {pipeline_mode = #tpu.pipeline_mode<synchronous>, transform_indices = @transform_3, window_bounds = array<i64: 1024, 256>}, {pipeline_mode = #tpu.pipeline_mode<synchronous>, transform_indices = @transform_4, window_bounds = array<i64: 1, 256>}, {transform_indices = @transform_5, window_bounds = array<i64: 16, 256>}]} {
    %c0 = arith.constant 0 : index
    %c0_0 = arith.constant 0 : index
    %0 = vector.load %arg1[%c0, %c0_0] : memref<16x256xf32, #tpu.memory_space<vmem>>, vector<16x256xf32>
    %1 = arith.truncf %0 : vector<16x256xf32> to vector<16x256xbf16>
    %c0_1 = arith.constant 0 : index
    %c0_2 = arith.constant 0 : index
    %2 = vector.load %arg2[%c0_1, %c0_2] : memref<256x1024xbf16, #tpu.memory_space<vmem>>, vector<256x1024xbf16>
    %cst = arith.constant dense<0.000000e+00> : vector<16x1024xf32>
    %3 = tpu.matmul %1, %2, %cst {dimension_numbers = #tpu.dot_dimension_numbers<[1], [0], [0], [1], [0, 0, 1, 1], [], []>} : vector<16x256xbf16>, vector<256x1024xbf16>, vector<16x1024xf32> -> vector<16x1024xf32>
    %c0_3 = arith.constant 0 : index
    %c0_4 = arith.constant 0 : index
    %4 = vector.load %arg3[%c0_3, %c0_4] : memref<1x1024xf32, #tpu.memory_space<vmem>>, vector<1x1024xf32>
    %5 = vector.broadcast %4 : vector<1x1024xf32> to vector<16x1024xf32>
    %6 = arith.addf %3, %5 : vector<16x1024xf32>
    %cst_5 = arith.constant 0.000000e+00 : f32
    %7 = vector.broadcast %cst_5 : f32 to vector<16x1024xf32>
    %8 = arith.maximumf %6, %7 : vector<16x1024xf32>
    %9 = arith.truncf %8 : vector<16x1024xf32> to vector<16x1024xbf16>
    %c0_6 = arith.constant 0 : index
    %c0_7 = arith.constant 0 : index
    %10 = vector.load %arg4[%c0_6, %c0_7] : memref<1024x256xbf16, #tpu.memory_space<vmem>>, vector<1024x256xbf16>
    %cst_8 = arith.constant dense<0.000000e+00> : vector<16x256xf32>
    %11 = tpu.matmul %9, %10, %cst_8 {dimension_numbers = #tpu.dot_dimension_numbers<[1], [0], [0], [1], [0, 0, 1, 1], [], []>} : vector<16x1024xbf16>, vector<1024x256xbf16>, vector<16x256xf32> -> vector<16x256xf32>
    %c0_9 = arith.constant 0 : index
    %c0_10 = arith.constant 0 : index
    %12 = vector.load %arg5[%c0_9, %c0_10] : memref<1x256xf32, #tpu.memory_space<vmem>>, vector<1x256xf32>
    %13 = vector.broadcast %12 : vector<1x256xf32> to vector<16x256xf32>
    %14 = arith.addf %11, %13 : vector<16x256xf32>
    %c0_11 = arith.constant 0 : index
    %c0_12 = arith.constant 0 : index
    %15 = vector.load %arg6[%c0_11, %c0_12] : memref<16x256xf32, #tpu.memory_space<vmem>>, vector<16x256xf32>
    tpu.vector_store %arg6[%c0_11, %c0_12], %14 {strides = array<i32>} : memref<16x256xf32, #tpu.memory_space<vmem>>, vector<16x256xf32>,
    return
  }
  func.func @transform_0(%arg0: i32) -> (i32, i32) {
    %c0_i32 = arith.constant 0 : i32
    %c0_i32_0 = arith.constant 0 : i32
    return %arg0, %c0_i32 : i32, i32
  }
  func.func @transform_1(%arg0: i32) -> (i32, i32) {
    %c0_i32 = arith.constant 0 : i32
    %c0_i32_0 = arith.constant 0 : i32
    %c0_i32_1 = arith.constant 0 : i32
    return %c0_i32, %c0_i32_0 : i32, i32
  }
  func.func @transform_2(%arg0: i32) -> (i32, i32) {
    %c0_i32 = arith.constant 0 : i32
    %c0_i32_0 = arith.constant 0 : i32
    %c0_i32_1 = arith.constant 0 : i32
    return %c0_i32, %c0_i32_0 : i32, i32
  }
  func.func @transform_3(%arg0: i32) -> (i32, i32) {
    %c0_i32 = arith.constant 0 : i32
    %c0_i32_0 = arith.constant 0 : i32
    %c0_i32_1 = arith.constant 0 : i32
    return %c0_i32, %c0_i32_0 : i32, i32
  }
  func.func @transform_4(%arg0: i32) -> (i32, i32) {
    %c0_i32 = arith.constant 0 : i32
    %c0_i32_0 = arith.constant 0 : i32
    %c0_i32_1 = arith.constant 0 : i32
    return %c0_i32, %c0_i32_0 : i32, i32
  }
  func.func @transform_5(%arg0: i32) -> (i32, i32) {
    %c0_i32 = arith.constant 0 : i32
    %c0_i32_0 = arith.constant 0 : i32
    return %arg0, %c0_i32 : i32, i32
  }
}

</mosaic_0001>

<bundles_post_ra>
// kernel: tpu_custom_call.1
= control target key start
LH: loop header
LB: loop body
LE: loop exit
PB: predicated region body
PF: predicated region fallthrough
CT: control target
= control target key end

     0   :  { %10 = vsyncpa [#allocation3], 0  ;;  %s3459_s0 = inlined_call_operand.hbm [shape: f32[18,256], index: 0, kind: input, shape index: {}]   ;;  %s3460_s1 = inlined_call_operand.hbm [shape: bf16[256,1024], index: 1, kind: input, shape index: {}]   ;;  %s3461_s2 = inlined_call_operand.hbm [shape: f32[1,1024], index: 2, kind: input, shape index: {}]   ;;  %s3462_s3 = inlined_call_operand.hbm [shape: bf16[1024,256], index: 3, kind: input, shape index: {}]   ;;  %s3463_s4 = inlined_call_operand.vmem [shape: f32[1,256], index: 4, kind: input, shape index: {}]   ;;  %s3464_s5 = inlined_call_operand.hbm [shape: f32[18,256], index: 5, kind: output, shape index: {}]  }
   0x1   :  { %12 = vsyncpa [#allocation3 + $0x1], 0 }
   0x2   :  { %13 = vsyncpa [#allocation6], 0 }
   0x3   :  { %14 = vsyncpa [#allocation9], 0 }
   0x4   :  { %15 = vsyncpa [#allocation4], 0 }
   0x5   :  { %17 = vsyncpa [#allocation4 + $0x1], 0  ;;  %s3182_s18 = smov 0   ;;  %s3184_s19 = smov 0  }
   0x6   :  { %s3186_s20 = smov 0   ;;  %s3188_s21 = smov 0  }
   0x7 LB: > { %s3203_s22 = sadd.s32 4294967295, %s3137_s21   ;;  %s2397_s23 = sadd.s32 4294967294, %s3137_s21   ;;  %s3137_s21 = sphi %s3188_s21, %s3483_s21   ;;  %s3133_s20 = sphi %s3186_s20, %s3482_s20   ;;  %s3129_s19 = sphi %s3184_s19, %s3481_s19   ;;  %s3125_s18 = sphi %s3182_s18, %s3480_s18  }
   0x8   : > { %s3207_s24 = sadd.s32 1, %s3137_s21   ;;  %s30_s25 = sadd.s32 1, %s3133_s20 }
   0x9   : > { %s27_s26 = ssub.s32 %s3137_s21, %s3207_s24  ;;  %p37_p0 = scmp.ne.s32.totalorder %s3133_s20, %s3129_s19 }
   0xa   : > { %p28_p1 = scmp.eq.s32.totalorder %s27_s26, 0  ;;  %p38_p2 = scmp.eq.s32.totalorder %s3137_s21, 0 }
   0xb   : > { %p43_p3 = scmp.ne.s32.totalorder %s3129_s19, %s3125_s18  ;;  %p3465_p4 = scmp.eq.s32.totalorder %s3203_s22, 0 }
   0xc   : > { %s3219_s27 = scalar_select %p28_p1, %s3133_s20, %s30_s25  }
   0xd   : > { %p3221_p5 = por %p38_p2, %p37_p0  ;;  %p3227_p6 = por %p3465_p4, %p43_p3 }
   0xe   : > { %p151_p7 = scmp.eq.s32.totalorder %s3203_s22, 1  ;;  %p157_p8 = scmp.eq.s32.totalorder %s2397_s23, 1 }
   0xf   : > { %s3468_s29 = scalar_select %p3227_p6, 1, 0 }
  0x10   : > { %p2398_p9 = scmp.ge.s32.totalorder %s3137_s21, 1  ;;  %p164_p10 = scmp.lt.s32.totalorder %s3137_s21, 3 }
  0x11   : > { %p3234_p11 = por %p151_p7, %p37_p0  ;;  %p3238_p12 = por %p157_p8, %p43_p3 }
  0x12   : > { %p3242_p13 = pnand %p2398_p9, %p164_p10  ;;  %s3139_s8 = smov [#allocation5]  }
  0x13   : > { %s3469_s30 = scalar_select %p3234_p11, 1, 0 }
  0x14   : > { %s3470_s6 = scalar_select %p3238_p12, 1, 0 }
  0x15   : > { %p2705_p1 = pneg %p3242_p13  ;;  %s176_s9 = sshll.u32 %s3139_s8, 4  ;;  %s177_s9 = int_to_ptr.vmem [resolvable:$true] %s176_s9 }
  0x16   : > { %s3140_s11 = smov [#allocation7]   ;;  %s2972_s13 = scalar_lea.vmem %s177_s9, 16384 }
  0x17   : > { %p3250_p2 = pnand %p2705_p1, %p3465_p4  ;;  %s190_s12 = sshll.u32 %s3140_s11, 4  ;;  %s191_s12 = int_to_ptr.vmem [resolvable:$true] %s190_s12 }
  0x18   : > { %p2973_p3 = scmp.ne.s32.totalorder %s177_s9, %s2972_s13  ;;  %p2980_p9 = scmp.lt.s32.totalorder %s177_s9, %s177_s9 }
  0x19   : > { %p2963_p0 = pneg %p3250_p2  ;;  %p2981_p10 = scmp.lt.s32.totalorder %s2972_s13, %s2972_s13 }
  0x1b   : > { %p2975_p7 = pnand %p2973_p3, %p2963_p0  ;;  %p2982_p12 = por %p2981_p10, %p2980_p9 }
  0x1d   : > { %p2976_p8 = pneg %p2975_p7 }
  0x1f   : > { %p2983_p1 = pnand %p2982_p12, %p2976_p8 }
  0x21   : > { %2986 = shalt.err (!%p2983_p1)
}
  0x22   : > { %s3141_s14 = smov 512   ;;  %s3142_s15 = smov 32  }
  0x23   : > { %2708 = dma.hbm_to_vmem [thread:$0]  (!%p3250_p2), %s3460_s1, 16384, %s177_s9, [#allocation6], %s3141_s14, %s3141_s14, %s3142_s15  }
  0x24   : > { %s2998_s23 = scalar_lea.vmem %s191_s12, 128  ;;  %p3006_p11 = scmp.lt.s32.totalorder %s191_s12, %s191_s12 }
  0x25   : > { %p2999_p4 = scmp.ne.s32.totalorder %s191_s12, %s2998_s23  ;;  %p3007_p6 = scmp.lt.s32.totalorder %s2998_s23, %s2998_s23 }
  0x27   : > { %p3001_p3 = pnand %p2999_p4, %p2963_p0  ;;  %p3008_p9 = por %p3007_p6, %p3006_p11 }
  0x29   : > { %p3002_p7 = pneg %p3001_p3 }
  0x2b   : > { %p3009_p12 = pnand %p3008_p9, %p3002_p7 }
  0x2d   : > { %3012 = shalt.err (!%p3009_p12)
}
  0x2e   : > { %2711 = dma.hbm_to_vmem [thread:$0]  (!%p3250_p2), %s3461_s2, 128, %s191_s12, [#allocation6]  }
  0x2f   : > { %s3143_s8 = smov [#allocation8]  }
  0x30   : > { %s200_s9 = sshll.u32 %s3143_s8, 4  ;;  %s201_s9 = int_to_ptr.vmem [resolvable:$true] %s200_s9 }
  0x31   : > { %s3024_s11 = scalar_lea.vmem %s201_s9, 16384  ;;  %p3032_p1 = scmp.lt.s32.totalorder %s201_s9, %s201_s9 }
  0x32   : > { %p3025_p8 = scmp.ne.s32.totalorder %s201_s9, %s3024_s11  ;;  %p3033_p6 = scmp.lt.s32.totalorder %s3024_s11, %s3024_s11 }
  0x34   : > { %p3027_p4 = pnand %p3025_p8, %p2963_p0  ;;  %p3034_p11 = por %p3033_p6, %p3032_p1 }
  0x36   : > { %p3028_p10 = pneg %p3027_p4 }
  0x38   : > { %p3035_p3 = pnand %p3034_p11, %p3028_p10 }
  0x3a   : > { %3038 = shalt.err (!%p3035_p3)
}
  0x3b   : > { %s3144_s13 = smov 128   ;;  %s3145_s14 = smov 8  }
  0x3c   : > { %2714 = dma.hbm_to_vmem [thread:$0]  (!%p3250_p2), %s3462_s3, 16384, %s201_s9, [#allocation9], %s3144_s13, %s3144_s13, %s3145_s14  }
  0x3d   : > { %p2402_p7 = scmp.ge.s32.totalorder %s3137_s21, 2 }
  0x3f   : > { %213 = sbr.rel (%p2402_p7) target bundleno = 100 (0x64), region = 32 }
  0x44   : > { %216 = sbr.rel (!%p3221_p5) target bundleno = 100 (0x64), region = 36  ;;  %s217_s16 = sand.u32 (%p3221_p5), 1, %s3133_s20  }
  0x45   : > { %s2404_s17 = sshll.u32 (%p3221_p5), %s3137_s21, 1  ;;  %s2403_s23 = sshll.u32 (%p3221_p5), %s217_s16, 5 }
  0x46   : > { %s223_s25 = ssub.s32 (%p3221_p5), 3, %s2404_s17  ;;  %s3290_s8 = scalar_lea.sflag (%p3221_p5), [#allocation3], %s217_s16 }
  0x47   : > { %p224_p0 = scmp.lt.s32.totalorder (%p3221_p5), %s223_s25, 2  ;;  %s221_s9 = scalar_lea.vmem (%p3221_p5), [#allocation2], %s2403_s23 }
  0x49   : > { %s3485_s25 = smov (!%p224_p0, %s223_s25), 2 }
  0x4a   : > { %s3287_s10 = sshll.u32 %s3485_s25, 8 }
  0x4b   : > { %s229_s26 = ssub.s32 512, %s3287_s10 }
  0x4c   : > { %230 = vsyncadd %s3290_s8, %s229_s26  ;;  %p2407_p5 = scmp.ne.s32.totalorder %s3287_s10, 0  ;;  %s2687_s28 = sshll.u32 %s3137_s21, 9 }
  0x4d   : > { %s3298_s14 = scalar_lea.hbm %s3459_s0, %s2687_s28  ;;  %s236_s15 = sshll.u32 %s221_s9, 4  ;;  %s3300_s15 = int_to_ptr.vmem [resolvable:$true] %s236_s15 }
  0x4e   : > { %s3039_s12 = scalar_lea.hbm %s3298_s14, %s3287_s10  ;;  %s3043_s23 = scalar_lea.hbm %s3459_s0, 768 }
  0x4f   : > { %p3040_p2 = scmp.ne.s32.totalorder %s3298_s14, %s3039_s12  ;;  %p3044_p8 = scmp.lt.s32.totalorder %s3298_s14, %s3459_s0 }
  0x50   : > { %p3045_p4 = scmp.lt.s32.totalorder %s3043_s23, %s3039_s12 }
  0x51   : > { %p3041_p9 = pnand %p3040_p2, %p2407_p5 }
  0x52   : > { %p3046_p10 = por %p3045_p4, %p3044_p8 }
  0x53   : > { %p3042_p12 = pneg %p3041_p9 }
  0x55   : > { %p3047_p1 = pnand %p3046_p10, %p3042_p12 }
  0x57   : > { %3050 = shalt.err (!%p3047_p1)
}
  0x58   : > { %s3051_s9 = scalar_lea.vmem %s3300_s15, %s3287_s10  ;;  %s3146_s28 = smov [#allocation2]  }
  0x59   : > { %p3052_p6 = scmp.ne.s32.totalorder %s3300_s15, %s3051_s9  ;;  %s3055_s11 = sshll.u32 %s3146_s28, 4  ;;  %s3056_s11 = int_to_ptr.vmem [resolvable:$false] %s3055_s11 }
  0x5a   : > { %s3057_s13 = scalar_lea.vmem %s3056_s11, 1024  ;;  %p3058_p0 = scmp.lt.s32.totalorder %s3300_s15, %s3056_s11 }
  0x5b   : > { %p3053_p11 = pnand %p3052_p6, %p2407_p5  ;;  %p3059_p2 = scmp.lt.s32.totalorder %s3057_s13, %s3051_s9 }
  0x5d   : > { %p3054_p3 = pneg %p3053_p11  ;;  %p3060_p9 = por %p3059_p2, %p3058_p0 }
  0x5f   : > { %p3061_p8 = pnand %p3060_p9, %p3054_p3 }
  0x61   : > { %3064 = shalt.err (!%p3061_p8)
}
  0x62   : > { %s3147_s12 = smov 256   ;;  %s3148_s16 = smov 16  }
  0x63   : > { %242 = dma.hbm_to_vmem [thread:$0]  (%p2407_p5), %s3298_s14, %s3287_s10, %s3300_s15, %s3290_s8, %s3147_s12, %s3147_s12, %s3148_s16  }
  0x64 PF: > { %248 = sbr.rel (%p3242_p13) target bundleno = 681 (0x2a9), region = 40  ;;  %s3329_s17 = sand.u32 (!%p3242_p13), 1, %s3129_s19  }
  0x65   : > { %s2413_s23 = sshll.u32 (!%p3242_p13), %s3329_s17, 5  ;;  %s251_s25 = scalar_lea.sflag (!%p3242_p13), [#allocation3], %s3329_s17 }
  0x66   : > { %s3335_s26 = scalar_lea.vmem (!%p3242_p13), [#allocation2], %s2413_s23  ;;  %p3473_p12 = scmp.ne.s32.totalorder (!%p3242_p13), %s3468_s29, 0 }
  0x69   : > { %3108 = dma.done.wait (%p3473_p12), %s251_s25, 512  }
  0x6a   : > { %3110 = vsyncadd (%p3473_p12), %s251_s25, 4294966784  ;;  %p3474_p5 = scmp.eq.s32.totalorder %s3203_s22, 0 }
  0x6c   : > { %3112 = dma.done.wait (%p3474_p5), [#allocation6], 16512   ;;  %p3475_p13 = pmov %p3474_p5 }
  0x6d   : > { %p3476_p4 = pmov %p3474_p5 }
  0x6e   : > { %3114 = vsyncadd (%p3475_p13), [#allocation6], 4294950784 }
  0x6f   : > { %3116 = dma.done.wait (%p3476_p4), [#allocation9], 16384   ;;  %p3477_p10 = pmov %p3476_p4 }
  0x70   : > { %v367_v0 = vld [vmem:[#allocation5 + $0x1c0] sm:$0xff]  ;;  %v368_v2 = vld [vmem:[#allocation5 + $0x1c8] sm:$0xff]  ;;  %v308_v54 = vld [vmem:[%s3335_s26 + $0x18] sm:$0xff]  ;;  %s292_s10 = scalar_lea.vmem [#allocation10], %s2413_s23  ;;  %s2274_s8 = scalar_lea.sflag [#allocation4], %s3329_s17 }
  0x71   : > { %3118 = vsyncadd (%p3477_p10), [#allocation9], 4294950912  ;;  %v371_v1 = vld [vmem:[#allocation5 + $0x1e0] sm:$0xff]  ;;  %v372_v4 = vld [vmem:[#allocation5 + $0x1e8] sm:$0xff]  ;;  %p3478_p1 = scmp.ne.s32.totalorder %s3469_s30, 0 }
  0x72   : > { %v2475_v3 = vcombine.high %v367_v0, %v371_v1  ;;  %v2474_v5 = vcombine.low %v367_v0, %v371_v1  ;;  %v359_v6 = vld [vmem:[#allocation5 + $0x180] sm:$0xff]  ;;  %v2477_v8 = vcombine.high %v368_v2, %v372_v4  ;;  %v2476_v9 = vcombine.low %v368_v2, %v372_v4  ;;  %v360_v11 = vld [vmem:[#allocation5 + $0x188] sm:$0xff]  ;;  %s2675_s14 = sshll.u32 (%p3478_p1), %s3203_s22, 1 }
  0x73   : > { %v363_v7 = vld [vmem:[#allocation5 + $0x1a0] sm:$0xff]  ;;  %v364_v12 = vld [vmem:[#allocation5 + $0x1a8] sm:$0xff]  ;;  %s2282_s15 = ssub.s32 (%p3478_p1), 3, %s2675_s14 }
  0x74   : > { %v2467_v10 = vcombine.high %v359_v6, %v363_v7  ;;  %v351_v13 = vld [vmem:[#allocation5 + $0x140] sm:$0xff]  ;;  %1121 = vmatprep.subr.bf16.mxu0 %v2475_v3  ;;  %v2469_v14 = vcombine.high %v360_v11, %v364_v12  ;;  %v352_v16 = vld [vmem:[#allocation5 + $0x148] sm:$0xff]  ;;  %1164 = vmatprep.subr.bf16.mxu1 %v2477_v8  ;;  %v2466_v18 = vcombine.low %v359_v6, %v363_v7  ;;  %p2283_p6 = scmp.lt.s32.totalorder (%p3478_p1), %s2282_s15, 2 }
  0x75   : > { %v355_v15 = vld [vmem:[#allocation5 + $0x160] sm:$0xff]  ;;  %v356_v17 = vld [vmem:[#allocation5 + $0x168] sm:$0xff]  ;;  %1122 = vmatpush1.bf16.msra.mxu0 %v2474_v5  ;;  %1165 = vmatpush1.bf16.msra.mxu1 %v2476_v9  ;;  %v2468_v19 = vcombine.low %v360_v11, %v364_v12 }
  0x76   : > { %1123 = vmatprep.subr.bf16.mxu0 %v2467_v10  ;;  %v2459_v20 = vcombine.high %v351_v13, %v355_v15  ;;  %1166 = vmatprep.subr.bf16.mxu1 %v2469_v14  ;;  %v2461_v21 = vcombine.high %v352_v16, %v356_v17  ;;  %v343_v22 = vld [vmem:[#allocation5 + $0x100] sm:$0xff]  ;;  %v344_v24 = vld [vmem:[#allocation5 + $0x108] sm:$0xff]  ;;  %v2458_v26 = vcombine.low %v351_v13, %v355_v15 }
  0x77   : > { %v347_v23 = vld [vmem:[#allocation5 + $0x120] sm:$0xff]  ;;  %v348_v25 = vld [vmem:[#allocation5 + $0x128] sm:$0xff]  ;;  %v2460_v27 = vcombine.low %v352_v16, %v356_v17 }
  0x78   : > { %v2451_v28 = vcombine.high %v343_v22, %v347_v23  ;;  %v2453_v29 = vcombine.high %v344_v24, %v348_v25  ;;  %v335_v30 = vld [vmem:[#allocation5 + $0xc0] sm:$0xff]  ;;  %v336_v32 = vld [vmem:[#allocation5 + $0xc8] sm:$0xff]  ;;  %v2450_v34 = vcombine.low %v343_v22, %v347_v23  ;;  %v2452_v35 = vcombine.low %v344_v24, %v348_v25 }
  0x79   : > { %1124 = vmatpush1.bf16.msra.mxu0 %v2466_v18  ;;  %1167 = vmatpush1.bf16.msra.mxu1 %v2468_v19  ;;  %v339_v31 = vld [vmem:[#allocation5 + $0xe0] sm:$0xff]  ;;  %v340_v33 = vld [vmem:[#allocation5 + $0xe8] sm:$0xff] }
  0x7a   : > { %1125 = vmatprep.subr.bf16.mxu0 %v2459_v20  ;;  %1168 = vmatprep.subr.bf16.mxu1 %v2461_v21  ;;  %v2443_v36 = vcombine.high %v335_v30, %v339_v31  ;;  %v2445_v37 = vcombine.high %v336_v32, %v340_v33  ;;  %v327_v38 = vld [vmem:[#allocation5 + $0x80] sm:$0xff]  ;;  %v328_v40 = vld [vmem:[#allocation5 + $0x88] sm:$0xff]  ;;  %v2442_v42 = vcombine.low %v335_v30, %v339_v31 }
  0x7b   : > { %v331_v39 = vld [vmem:[#allocation5 + $0xa0] sm:$0xff]  ;;  %v332_v41 = vld [vmem:[#allocation5 + $0xa8] sm:$0xff]  ;;  %v2444_v43 = vcombine.low %v336_v32, %v340_v33 }
  0x7c   : > { %v2435_v44 = vcombine.high %v327_v38, %v331_v39  ;;  %v2437_v45 = vcombine.high %v328_v40, %v332_v41  ;;  %v319_v46 = vld [vmem:[#allocation5 + $0x40] sm:$0xff]  ;;  %v320_v48 = vld [vmem:[#allocation5 + $0x48] sm:$0xff]  ;;  %v2434_v50 = vcombine.low %v327_v38, %v331_v39  ;;  %v2436_v51 = vcombine.low %v328_v40, %v332_v41 }
  0x7d   : > { %1126 = vmatpush1.bf16.msra.mxu0 %v2458_v26  ;;  %1169 = vmatpush1.bf16.msra.mxu1 %v2460_v27  ;;  %v323_v47 = vld [vmem:[#allocation5 + $0x60] sm:$0xff]  ;;  %v324_v49 = vld [vmem:[#allocation5 + $0x68] sm:$0xff] }
  0x7e   : > { %1127 = vmatprep.subr.bf16.mxu0 %v2451_v28  ;;  %1170 = vmatprep.subr.bf16.mxu1 %v2453_v29  ;;  %v2427_v52 = vcombine.high %v319_v46, %v323_v47  ;;  %v306_v53 = vld [vmem:[%s3335_s26 + $0x8] sm:$0xff]  ;;  %v2429_v55 = vcombine.high %v320_v48, %v324_v49  ;;  %v311_v56 = vld [vmem:[#allocation5] sm:$0xff]  ;;  %v2426_v61 = vcombine.low %v319_v46, %v323_v47 }
  0x7f   : > { %v315_v57 = vld [vmem:[#allocation5 + $0x20] sm:$0xff]  ;;  %v3351_v58 = vpack.c.bf16 %v308_v54, %v306_v53  ;;  %v312_v59 = vld [vmem:[#allocation5 + $0x8] sm:$0xff]  ;;  %v2428_v62 = vcombine.low %v320_v48, %v324_v49 }
  0x80   : > { %v316_v60 = vld [vmem:[#allocation5 + $0x28] sm:$0xff]  ;;  %v2419_v63 = vcombine.high %v311_v56, %v315_v57  ;;  %v431_v1 = vld [vmem:[#allocation5 + $0x3c0] sm:$0xff]  ;;  %v2418_v5 = vcombine.low %v311_v56, %v315_v57 }
  0x81   : > { %1128 = vmatpush1.bf16.msra.mxu0 %v2450_v34  ;;  %1171 = vmatpush1.bf16.msra.mxu1 %v2452_v35  ;;  %v2421_v0 = vcombine.high %v312_v59, %v316_v60  ;;  %v435_v2 = vld [vmem:[#allocation5 + $0x3e0] sm:$0xff]  ;;  %v432_v3 = vld [vmem:[#allocation5 + $0x3c8] sm:$0xff]  ;;  %v2420_v6 = vcombine.low %v312_v59, %v316_v60 }
  0x82   : > { %1129 = vmatprep.subr.bf16.mxu0 %v2443_v36  ;;  %1172 = vmatprep.subr.bf16.mxu1 %v2445_v37  ;;  %v436_v4 = vld [vmem:[#allocation5 + $0x3e8] sm:$0xff]  ;;  %v2539_v7 = vcombine.high %v431_v1, %v435_v2  ;;  %v423_v9 = vld [vmem:[#allocation5 + $0x380] sm:$0xff]  ;;  %v2538_v13 = vcombine.low %v431_v1, %v435_v2 }
  0x83   : > { %1153 = vmatprep.mubr.bf16.mxu0 %v3351_v58  ;;  %1196 = vmatprep.mubr.bf16.mxu1 %v3351_v58  ;;  %v2541_v8 = vcombine.high %v432_v3, %v436_v4  ;;  %v427_v10 = vld [vmem:[#allocation5 + $0x3a0] sm:$0xff]  ;;  %v424_v11 = vld [vmem:[#allocation5 + $0x388] sm:$0xff]  ;;  %v2540_v14 = vcombine.low %v432_v3, %v436_v4  ;;  %v369_v3 = vld [vmem:[#allocation5 + $0x1d0] sm:$0xff] }
  0x84   : > { %v428_v12 = vld [vmem:[#allocation5 + $0x3a8] sm:$0xff]  ;;  %v2531_v15 = vcombine.high %v423_v9, %v427_v10  ;;  %v415_v17 = vld [vmem:[#allocation5 + $0x340] sm:$0xff]  ;;  %v2530_v21 = vcombine.low %v423_v9, %v427_v10  ;;  %v373_v4 = vld [vmem:[#allocation5 + $0x1f0] sm:$0xff] }
  0x85   : > { %1130 = vmatpush1.bf16.msra.mxu0 %v2442_v42  ;;  %1173 = vmatpush1.bf16.msra.mxu1 %v2444_v43  ;;  %v2533_v16 = vcombine.high %v424_v11, %v428_v12  ;;  %v419_v18 = vld [vmem:[#allocation5 + $0x360] sm:$0xff]  ;;  %v416_v19 = vld [vmem:[#allocation5 + $0x348] sm:$0xff]  ;;  %v2532_v22 = vcombine.low %v424_v11, %v428_v12  ;;  %v2479_v10 = vcombine.high %v369_v3, %v373_v4  ;;  %v361_v12 = vld [vmem:[#allocation5 + $0x190] sm:$0xff] }
  0x86   : > { %1131 = vmatprep.subr.bf16.mxu0 %v2435_v44  ;;  %1174 = vmatprep.subr.bf16.mxu1 %v2437_v45  ;;  %v420_v20 = vld [vmem:[#allocation5 + $0x368] sm:$0xff]  ;;  %v2523_v23 = vcombine.high %v415_v17, %v419_v18  ;;  %v407_v25 = vld [vmem:[#allocation5 + $0x300] sm:$0xff]  ;;  %v2522_v29 = vcombine.low %v415_v17, %v419_v18  ;;  %v2478_v17 = vcombine.low %v369_v3, %v373_v4  ;;  %v437_v3 = vld [vmem:[#allocation5 + $0x3f0] sm:$0xff] }
  0x87   : > { %v2525_v24 = vcombine.high %v416_v19, %v420_v20  ;;  %v411_v26 = vld [vmem:[#allocation5 + $0x320] sm:$0xff]  ;;  %v408_v27 = vld [vmem:[#allocation5 + $0x308] sm:$0xff]  ;;  %v2524_v30 = vcombine.low %v416_v19, %v420_v20 }
  0x88   : > { %v412_v28 = vld [vmem:[#allocation5 + $0x328] sm:$0xff]  ;;  %v2515_v31 = vcombine.high %v407_v25, %v411_v26  ;;  %v399_v33 = vld [vmem:[#allocation5 + $0x2c0] sm:$0xff]  ;;  %v2514_v37 = vcombine.low %v407_v25, %v411_v26 }
  0x89   : > { %1132 = vmatpush1.bf16.msra.mxu0 %v2434_v50  ;;  %1175 = vmatpush1.bf16.msra.mxu1 %v2436_v51  ;;  %v2517_v32 = vcombine.high %v408_v27, %v412_v28  ;;  %v403_v34 = vld [vmem:[#allocation5 + $0x2e0] sm:$0xff]  ;;  %v400_v35 = vld [vmem:[#allocation5 + $0x2c8] sm:$0xff]  ;;  %v2516_v38 = vcombine.low %v408_v27, %v412_v28 }
  0x8a   : > { %1133 = vmatprep.subr.bf16.mxu0 %v2427_v52  ;;  %1176 = vmatprep.subr.bf16.mxu1 %v2429_v55  ;;  %v404_v36 = vld [vmem:[#allocation5 + $0x2e8] sm:$0xff]  ;;  %v2507_v39 = vcombine.high %v399_v33, %v403_v34  ;;  %v391_v41 = vld [vmem:[#allocation5 + $0x280] sm:$0xff]  ;;  %v2506_v45 = vcombine.low %v399_v33, %v403_v34 }
  0x8b   : > { %v2509_v40 = vcombine.high %v400_v35, %v404_v36  ;;  %v395_v42 = vld [vmem:[#allocation5 + $0x2a0] sm:$0xff]  ;;  %v392_v43 = vld [vmem:[#allocation5 + $0x288] sm:$0xff]  ;;  %v2508_v46 = vcombine.low %v400_v35, %v404_v36 }
  0x8c   : > { %v396_v44 = vld [vmem:[#allocation5 + $0x2a8] sm:$0xff]  ;;  %v2499_v47 = vcombine.high %v391_v41, %v395_v42  ;;  %v383_v49 = vld [vmem:[#allocation5 + $0x240] sm:$0xff]  ;;  %v2498_v53 = vcombine.low %v391_v41, %v395_v42 }
  0x8d   : > { %1134 = vmatpush1.bf16.msra.mxu0 %v2426_v61  ;;  %1177 = vmatpush1.bf16.msra.mxu1 %v2428_v62  ;;  %v2501_v48 = vcombine.high %v392_v43, %v396_v44  ;;  %v387_v50 = vld [vmem:[#allocation5 + $0x260] sm:$0xff]  ;;  %v384_v51 = vld [vmem:[#allocation5 + $0x248] sm:$0xff]  ;;  %v2500_v54 = vcombine.low %v392_v43, %v396_v44  ;;  %v329_v44 = vld [vmem:[#allocation5 + $0x90] sm:$0xff] }
  0x8e   : > { %1135 = vmatprep.subr.bf16.mxu0 %v2419_v63  ;;  %1178 = vmatprep.subr.bf16.mxu1 %v2421_v0  ;;  %v388_v52 = vld [vmem:[#allocation5 + $0x268] sm:$0xff]  ;;  %v2491_v55 = vcombine.high %v383_v49, %v387_v50  ;;  %v375_v57 = vld [vmem:[#allocation5 + $0x200] sm:$0xff]  ;;  %v2490_v62 = vcombine.low %v383_v49, %v387_v50  ;;  %v321_v49 = vld [vmem:[#allocation5 + $0x50] sm:$0xff] }
  0x8f   : > { %v2493_v56 = vcombine.high %v384_v51, %v388_v52  ;;  %v379_v59 = vld [vmem:[#allocation5 + $0x220] sm:$0xff]  ;;  %v376_v60 = vld [vmem:[#allocation5 + $0x208] sm:$0xff]  ;;  %v2492_v63 = vcombine.low %v384_v51, %v388_v52  ;;  %v325_v50 = vld [vmem:[#allocation5 + $0x70] sm:$0xff] }
  0x90   : > { %v380_v61 = vld [vmem:[#allocation5 + $0x228] sm:$0xff]  ;;  %v2483_v0 = vcombine.high %v375_v57, %v379_v59  ;;  %v305_v2 = vld [vmem:[%s3335_s26] sm:$0xff] }
  0x91   : > { %1136 = vmatpush1.bf16.msra.mxu0 %v2418_v5  ;;  %1179 = vmatpush1.bf16.msra.mxu1 %v2420_v6  ;;  %v2485_v1 = vcombine.high %v376_v60, %v380_v61  ;;  %v370_v5 = vld [vmem:[#allocation5 + $0x1d8] sm:$0xff]  ;;  %v2484_v9 = vcombine.low %v376_v60, %v380_v61  ;;  %v2431_v61 = vcombine.high %v321_v49, %v325_v50 }
  0x92   : > { %1137 = vmatprep.subr.bf16.mxu0 %v2539_v7  ;;  %1180 = vmatprep.subr.bf16.mxu1 %v2541_v8  ;;  %v374_v6 = vld [vmem:[#allocation5 + $0x1f8] sm:$0xff]  ;;  %v2482_v7 = vcombine.low %v375_v57, %v379_v59  ;;  %v307_v8 = vld [vmem:[%s3335_s26 + $0x10] sm:$0xff] }
  0x93   : > { %v2481_v11 = vcombine.high %v370_v5, %v374_v6  ;;  %v2480_v18 = vcombine.low %v370_v5, %v374_v6  ;;  %v313_v57 = vld [vmem:[#allocation5 + $0x10] sm:$0xff]  ;;  %v434_v6 = vld [vmem:[#allocation5 + $0x3d8] sm:$0xff] }
  0x94   : > { %v317_v59 = vld [vmem:[#allocation5 + $0x30] sm:$0xff] }
  0x95   : > { %1138 = vmatpush2.bf16.msra.mxu0 %v2538_v13  ;;  %1181 = vmatpush2.bf16.msra.mxu1 %v2540_v14  ;;  %v365_v13 = vld [vmem:[#allocation5 + $0x1b0] sm:$0xff]  ;;  %v3357_v14 = vpack.c.bf16 %v307_v8, %v305_v2  ;;  %v2423_v5 = vcombine.high %v313_v57, %v317_v59 }
  0x96   : > { %1139 = vmatprep.subr.bf16.mxu0 %v2531_v15  ;;  %1182 = vmatprep.subr.bf16.mxu1 %v2533_v16  ;;  %v362_v15 = vld [vmem:[#allocation5 + $0x198] sm:$0xff]  ;;  %v2471_v19 = vcombine.high %v361_v12, %v365_v13  ;;  %v2470_v25 = vcombine.low %v361_v12, %v365_v13  ;;  %v433_v2 = vld [vmem:[#allocation5 + $0x3d0] sm:$0xff] }
  0x97   : > { %v366_v16 = vld [vmem:[#allocation5 + $0x1b8] sm:$0xff]  ;;  %v2543_v13 = vcombine.high %v433_v2, %v437_v3 }
  0x98   : > { %v2473_v20 = vcombine.high %v362_v15, %v366_v16  ;;  %v2472_v26 = vcombine.low %v362_v15, %v366_v16  ;;  %v426_v15 = vld [vmem:[#allocation5 + $0x398] sm:$0xff] }
  0x99   : > { %1140 = vmatpush2.bf16.msra.mxu0 %v2530_v21  ;;  %1183 = vmatpush2.bf16.msra.mxu1 %v2532_v22  ;;  %v353_v21 = vld [vmem:[#allocation5 + $0x150] sm:$0xff]  ;;  %v430_v16 = vld [vmem:[#allocation5 + $0x3b8] sm:$0xff] }
  0x9a   : > { %1141 = vmatprep.subr.bf16.mxu0 %v2523_v23  ;;  %1184 = vmatprep.subr.bf16.mxu1 %v2525_v24  ;;  %v357_v22 = vld [vmem:[#allocation5 + $0x170] sm:$0xff]  ;;  %v354_v23 = vld [vmem:[#allocation5 + $0x158] sm:$0xff] }
  0x9b   : > { %v358_v24 = vld [vmem:[#allocation5 + $0x178] sm:$0xff]  ;;  %v2463_v27 = vcombine.high %v353_v21, %v357_v22  ;;  %v2462_v33 = vcombine.low %v353_v21, %v357_v22 }
  0x9c   : > { %v2465_v28 = vcombine.high %v354_v23, %v358_v24  ;;  %v2464_v34 = vcombine.low %v354_v23, %v358_v24  ;;  %v418_v23 = vld [vmem:[#allocation5 + $0x358] sm:$0xff] }
  0x9d   : > { %1142 = vmatpush2.bf16.msra.mxu0 %v2522_v29  ;;  %1185 = vmatpush2.bf16.msra.mxu1 %v2524_v30  ;;  %v345_v29 = vld [vmem:[#allocation5 + $0x110] sm:$0xff]  ;;  %v422_v24 = vld [vmem:[#allocation5 + $0x378] sm:$0xff] }
  0x9e   : > { %1143 = vmatprep.subr.bf16.mxu0 %v2515_v31  ;;  %1186 = vmatprep.subr.bf16.mxu1 %v2517_v32  ;;  %v349_v30 = vld [vmem:[#allocation5 + $0x130] sm:$0xff]  ;;  %v346_v31 = vld [vmem:[#allocation5 + $0x118] sm:$0xff] }
  0x9f   : > { %v350_v32 = vld [vmem:[#allocation5 + $0x138] sm:$0xff]  ;;  %v2455_v35 = vcombine.high %v345_v29, %v349_v30  ;;  %v2454_v41 = vcombine.low %v345_v29, %v349_v30  ;;  %v2536_v29 = vcombine.low %v426_v15, %v430_v16 }
  0xa0   : > { %v2457_v36 = vcombine.high %v346_v31, %v350_v32  ;;  %v2456_v42 = vcombine.low %v346_v31, %v350_v32  ;;  %v410_v31 = vld [vmem:[#allocation5 + $0x318] sm:$0xff] }
  0xa1   : > { %1144 = vmatpush2.bf16.msra.mxu0 %v2514_v37  ;;  %1187 = vmatpush2.bf16.msra.mxu1 %v2516_v38  ;;  %v337_v37 = vld [vmem:[#allocation5 + $0xd0] sm:$0xff]  ;;  %v414_v32 = vld [vmem:[#allocation5 + $0x338] sm:$0xff] }
  0xa2   : > { %1145 = vmatprep.subr.bf16.mxu0 %v2507_v39  ;;  %1188 = vmatprep.subr.bf16.mxu1 %v2509_v40  ;;  %v341_v38 = vld [vmem:[#allocation5 + $0xf0] sm:$0xff]  ;;  %v338_v39 = vld [vmem:[#allocation5 + $0xd8] sm:$0xff] }
  0xa3   : > { %v342_v40 = vld [vmem:[#allocation5 + $0xf8] sm:$0xff]  ;;  %v2447_v43 = vcombine.high %v337_v37, %v341_v38 }
  0xa4   : > { %v2448_v51 = vcombine.low %v338_v39, %v342_v40 }
  0xa5   : > { %1146 = vmatpush2.bf16.msra.mxu0 %v2506_v45  ;;  %1189 = vmatpush2.bf16.msra.mxu1 %v2508_v46  ;;  %v333_v45 = vld [vmem:[#allocation5 + $0xb0] sm:$0xff]  ;;  %v330_v46 = vld [vmem:[#allocation5 + $0x98] sm:$0xff] }
  0xa6   : > { %1147 = vmatprep.subr.bf16.mxu0 %v2499_v47  ;;  %1190 = vmatprep.subr.bf16.mxu1 %v2501_v48  ;;  %v334_v47 = vld [vmem:[#allocation5 + $0xb8] sm:$0xff]  ;;  %v2446_v48 = vcombine.low %v337_v37, %v341_v38  ;;  %v2439_v52 = vcombine.high %v329_v44, %v333_v45  ;;  %v2521_v37 = vcombine.high %v410_v31, %v414_v32  ;;  %v401_v38 = vld [vmem:[#allocation5 + $0x2d0] sm:$0xff] }
  0xa7   : > { %v2440_v60 = vcombine.low %v330_v46, %v334_v47 }
  0xa9   : > { %1148 = vmatpush2.bf16.msra.mxu0 %v2498_v53  ;;  %1191 = vmatpush2.bf16.msra.mxu1 %v2500_v54  ;;  %v322_v53 = vld [vmem:[#allocation5 + $0x58] sm:$0xff] }
  0xaa   : > { %1149 = vmatprep.subr.bf16.mxu0 %v2491_v55  ;;  %1192 = vmatprep.subr.bf16.mxu1 %v2493_v56  ;;  %v326_v54 = vld [vmem:[#allocation5 + $0x78] sm:$0xff]  ;;  %v2441_v55 = vcombine.high %v330_v46, %v334_v47  ;;  %v2438_v56 = vcombine.low %v329_v44, %v333_v45  ;;  %v393_v45 = vld [vmem:[#allocation5 + $0x290] sm:$0xff] }
  0xab   : > { %v2432_v4 = vcombine.low %v322_v53, %v326_v54  ;;  %v397_v46 = vld [vmem:[#allocation5 + $0x2b0] sm:$0xff]  ;;  %v394_v47 = vld [vmem:[#allocation5 + $0x298] sm:$0xff] }
  0xad   : > { %1150 = vmatpush2.bf16.msra.mxu0 %v2490_v62  ;;  %1193 = vmatpush2.bf16.msra.mxu1 %v2492_v63  ;;  %v314_v62 = vld [vmem:[#allocation5 + $0x18] sm:$0xff] }
  0xae   : > { %1151 = vmatprep.subr.bf16.mxu0 %v2483_v0  ;;  %1194 = vmatprep.subr.bf16.mxu1 %v2485_v1  ;;  %v318_v63 = vld [vmem:[#allocation5 + $0x38] sm:$0xff]  ;;  %v2433_v0 = vcombine.high %v322_v53, %v326_v54  ;;  %v2430_v1 = vcombine.low %v321_v49, %v325_v50  ;;  %v385_v53 = vld [vmem:[#allocation5 + $0x250] sm:$0xff] }
  0xaf   : > { %v2425_v8 = vcombine.high %v314_v62, %v318_v63  ;;  %v2424_v12 = vcombine.low %v314_v62, %v318_v63  ;;  %v389_v54 = vld [vmem:[#allocation5 + $0x270] sm:$0xff] }
  0xb0   : > { %v377_v62 = vld [vmem:[#allocation5 + $0x210] sm:$0xff] }
  0xb1   : > { %1152 = vmatpush2.bf16.msra.mxu0 %v2482_v7  ;;  %1195 = vmatpush2.bf16.msra.mxu1 %v2484_v9  ;;  %v438_v7 = vld [vmem:[#allocation5 + $0x3f8] sm:$0xff]  ;;  %v2422_v9 = vcombine.low %v313_v57, %v317_v59  ;;  %v2502_v57 = vcombine.low %v393_v45, %v397_v46  ;;  %v381_v63 = vld [vmem:[#allocation5 + $0x230] sm:$0xff] }
  0xb2   : > { %1207 = vmatprep.subr.bf16.mxu0 %v2479_v10  ;;  %1250 = vmatprep.subr.bf16.mxu1 %v2481_v11  ;;  %v425_v10 = vld [vmem:[#allocation5 + $0x390] sm:$0xff]  ;;  %v2544_v21 = vcombine.low %v434_v6, %v438_v7 }
  0xb3   : > { %v429_v11 = vld [vmem:[#allocation5 + $0x3b0] sm:$0xff] }
  0xb4   : > { %1154 = vmatmul.mubr.bf16.vlgmr.msra.gmra.mxu0 %v3357_v14  ;;  %1197 = vmatmul.mubr.bf16.vlgmr.msra.gmra.mxu1 %v3357_v14  ;;  %v2535_v22 = vcombine.high %v425_v10, %v429_v11 }
  0xb5   : > { %1208 = vmatpush1.bf16.msra.mxu0 %v2478_v17  ;;  %1251 = vmatpush1.bf16.msra.mxu1 %v2480_v18  ;;  %v2545_v17 = vcombine.high %v434_v6, %v438_v7  ;;  %v2542_v18 = vcombine.low %v433_v2, %v437_v3  ;;  %v2494_v2 = vcombine.low %v385_v53, %v389_v54 }
  0xb6   : > { %1209 = vmatprep.subr.bf16.mxu0 %v2471_v19  ;;  %1252 = vmatprep.subr.bf16.mxu1 %v2473_v20  ;;  %v417_v19 = vld [vmem:[#allocation5 + $0x350] sm:$0xff]  ;;  %v2486_v6 = vcombine.low %v377_v62, %v381_v63 }
  0xb7   : > { %1239 = vmatprep.mubr.bf16.mxu0 %v3351_v58  ;;  %1282 = vmatprep.mubr.bf16.mxu1 %v3351_v58  ;;  %v2449_v58 = vcombine.high %v338_v39, %v342_v40  ;;  %v421_v20 = vld [vmem:[#allocation5 + $0x370] sm:$0xff]  ;;  %v402_v40 = vld [vmem:[#allocation5 + $0x2d8] sm:$0xff] }
  0xb8   : > { %v2527_v30 = vcombine.high %v417_v19, %v421_v20  ;;  %v405_v39 = vld [vmem:[#allocation5 + $0x2f0] sm:$0xff] }
  0xb9   : > { %1210 = vmatpush1.bf16.msra.mxu0 %v2470_v25  ;;  %1253 = vmatpush1.bf16.msra.mxu1 %v2472_v26  ;;  %v2537_v25 = vcombine.high %v426_v15, %v430_v16  ;;  %v2534_v26 = vcombine.low %v425_v10, %v429_v11  ;;  %v2511_v44 = vcombine.high %v401_v38, %v405_v39  ;;  %v2769_v10 = vld [vmem:[#allocation8 + $0x70] ss:$8 sps:$4 sm:$0xff]   ;;  %v2775_v15 = vld [vmem:[#allocation8 + $0x60] ss:$8 sps:$4 sm:$0xff]  }
  0xba   : > { %1211 = vmatprep.subr.bf16.mxu0 %v2463_v27  ;;  %1254 = vmatprep.subr.bf16.mxu1 %v2465_v28  ;;  %v409_v27 = vld [vmem:[#allocation5 + $0x310] sm:$0xff]  ;;  %v2510_v49 = vcombine.low %v401_v38, %v405_v39  ;;  %v2772_v11 = vld [vmem:[#allocation8 + $0x170] ss:$8 sps:$4 sm:$0xff]  }
  0xbb   : > { %v413_v28 = vld [vmem:[#allocation5 + $0x330] sm:$0xff] }
  0xbc   : > { %v2778_v16 = vld [vmem:[#allocation8 + $0x160] ss:$8 sps:$4 sm:$0xff]  }
  0xbd   : > { %1212 = vmatpush1.bf16.msra.mxu0 %v2462_v33  ;;  %1255 = vmatpush1.bf16.msra.mxu1 %v2464_v34  ;;  %v2529_v33 = vcombine.high %v418_v23, %v422_v24  ;;  %v2526_v34 = vcombine.low %v417_v19, %v421_v20  ;;  %v2781_v19 = vld [vmem:[#allocation8 + $0x50] ss:$8 sps:$4 sm:$0xff]   ;;  %v2811_v38 = vld [vmem:[#allocation8] ss:$8 sps:$4 sm:$0xff]  }
  0xbe   : > { %1213 = vmatprep.subr.bf16.mxu0 %v2455_v35  ;;  %1256 = vmatprep.subr.bf16.mxu1 %v2457_v36  ;;  %v2528_v35 = vcombine.low %v418_v23, %v422_v24  ;;  %v2519_v36 = vcombine.high %v409_v27, %v413_v28  ;;  %v2784_v20 = vld [vmem:[#allocation8 + $0x150] ss:$8 sps:$4 sm:$0xff]   ;;  %v2787_v23 = vld [vmem:[#allocation8 + $0x40] ss:$8 sps:$4 sm:$0xff]   ;;  %v2795_v24 = vld [vmem:[#allocation8 + $0x34] ss:$8 sps:$4 sm:$0xff]  }
  0xbf   : > { %v2814_v39 = vld [vmem:[#allocation8 + $0x100] ss:$8 sps:$4 sm:$0xff]  }
  0xc1   : > { %1214 = vmatpush1.bf16.msra.mxu0 %v2454_v41  ;;  %1257 = vmatpush1.bf16.msra.mxu1 %v2456_v42  ;;  %v406_v41 = vld [vmem:[#allocation5 + $0x2f8] sm:$0xff]  ;;  %v2518_v42 = vcombine.low %v409_v27, %v413_v28  ;;  %v2801_v28 = vld [vmem:[#allocation8 + $0x24] ss:$8 sps:$4 sm:$0xff]  }
  0xc2   : > { %1215 = vmatprep.subr.bf16.mxu0 %v2447_v43  ;;  %1258 = vmatprep.subr.bf16.mxu1 %v2449_v58  ;;  %v2520_v43 = vcombine.low %v410_v31, %v414_v32  ;;  %v2513_v58 = vcombine.high %v402_v40, %v406_v41  ;;  %v2512_v50 = vcombine.low %v402_v40, %v406_v41  ;;  %v2796_v27 = vld [vmem:[#allocation8 + $0x130] ss:$8 sps:$4 sm:$0xff]   ;;  %v2802_v31 = vld [vmem:[#allocation8 + $0x120] ss:$8 sps:$4 sm:$0xff]   ;;  %v2807_v32 = vld [vmem:[#allocation8 + $0x14] ss:$8 sps:$4 sm:$0xff]  }
  0xc3   : > { %v2819_v40 = vld [vmem:[#allocation8 + $0xf4] ss:$8 sps:$4 sm:$0xff]  }
  0xc4   : > { %v2822_v41 = vld [vmem:[#allocation8 + $0x1f4] ss:$8 sps:$4 sm:$0xff]  }
  0xc5   : > { %1216 = vmatpush1.bf16.msra.mxu0 %v2446_v48  ;;  %1259 = vmatpush1.bf16.msra.mxu1 %v2448_v51  ;;  %v398_v48 = vld [vmem:[#allocation5 + $0x2b8] sm:$0xff]  ;;  %v2503_v51 = vcombine.high %v393_v45, %v397_v46  ;;  %v2823_v45 = vld [vmem:[#allocation8 + $0xe0] ss:$8 sps:$4 sm:$0xff]  }
  0xc6   : > { %1217 = vmatprep.subr.bf16.mxu0 %v2439_v52  ;;  %1260 = vmatprep.subr.bf16.mxu1 %v2441_v55  ;;  %v2505_v52 = vcombine.high %v394_v47, %v398_v48  ;;  %v386_v55 = vld [vmem:[#allocation5 + $0x258] sm:$0xff]  ;;  %v2504_v59 = vcombine.low %v394_v47, %v398_v48  ;;  %v2826_v46 = vld [vmem:[#allocation8 + $0x1e0] ss:$8 sps:$4 sm:$0xff]  }
  0xc7   : > { %v2831_v47 = vld [vmem:[#allocation8 + $0xd4] ss:$8 sps:$4 sm:$0xff]  }
  0xc8   : > { %v2834_v48 = vld [vmem:[#allocation8 + $0x1d4] ss:$8 sps:$4 sm:$0xff]  }
  0xc9   : > { %1218 = vmatpush1.bf16.msra.mxu0 %v2438_v56  ;;  %1261 = vmatpush1.bf16.msra.mxu1 %v2440_v60  ;;  %v390_v56 = vld [vmem:[#allocation5 + $0x278] sm:$0xff]  ;;  %v2495_v60 = vcombine.high %v385_v53, %v389_v54  ;;  %v2835_v53 = vld [vmem:[#allocation8 + $0xc0] ss:$8 sps:$4 sm:$0xff]  }
  0xca   : > { %1219 = vmatprep.subr.bf16.mxu0 %v2431_v61  ;;  %1262 = vmatprep.subr.bf16.mxu1 %v2433_v0  ;;  %v2497_v61 = vcombine.high %v386_v55, %v390_v56  ;;  %v378_v0 = vld [vmem:[#allocation5 + $0x218] sm:$0xff]  ;;  %v2496_v3 = vcombine.low %v386_v55, %v390_v56  ;;  %v2838_v54 = vld [vmem:[#allocation8 + $0x1c0] ss:$8 sps:$4 sm:$0xff]  }
  0xcb   : > { %v2843_v55 = vld [vmem:[#allocation8 + $0xb4] ss:$8 sps:$4 sm:$0xff]  }
  0xcc   : > { %v2846_v56 = vld [vmem:[#allocation8 + $0x1b4] ss:$8 sps:$4 sm:$0xff]  }
  0xcd   : > { %1220 = vmatpush1.bf16.msra.mxu0 %v2430_v1  ;;  %1263 = vmatpush1.bf16.msra.mxu1 %v2432_v4  ;;  %v382_v1 = vld [vmem:[#allocation5 + $0x238] sm:$0xff]  ;;  %v2487_v4 = vcombine.high %v377_v62, %v381_v63  ;;  %v2847_v62 = vld [vmem:[#allocation8 + $0xa0] ss:$8 sps:$4 sm:$0xff]  }
  0xce   : > { %1221 = vmatprep.subr.bf16.mxu0 %v2423_v5  ;;  %1264 = vmatprep.subr.bf16.mxu1 %v2425_v8  ;;  %v2489_v5 = vcombine.high %v378_v0, %v382_v1  ;;  %v2488_v7 = vcombine.low %v378_v0, %v382_v1  ;;  %v2771_v8 = vld [vmem:[#allocation8 + $0x74] ss:$8 sps:$4 sm:$0xff]   ;;  %v2850_v63 = vld [vmem:[#allocation8 + $0x1a0] ss:$8 sps:$4 sm:$0xff]  }
  0xcf   : > { %v2855_v0 = vld [vmem:[#allocation8 + $0x94] ss:$8 sps:$4 sm:$0xff]  }
  0xd0   : > { %v2858_v1 = vld [vmem:[#allocation8 + $0x194] ss:$8 sps:$4 sm:$0xff]  }
  0xd1   : > { %1222 = vmatpush1.bf16.msra.mxu0 %v2422_v9  ;;  %1265 = vmatpush1.bf16.msra.mxu1 %v2424_v12  ;;  %v2774_v9 = vld [vmem:[#allocation8 + $0x174] ss:$8 sps:$4 sm:$0xff]   ;;  %v2777_v12 = vld [vmem:[#allocation8 + $0x64] ss:$8 sps:$4 sm:$0xff]  }
  0xd2   : > { %1223 = vmatprep.subr.bf16.mxu0 %v2543_v13  ;;  %1266 = vmatprep.subr.bf16.mxu1 %v2545_v17  ;;  %v2780_v13 = vld [vmem:[#allocation8 + $0x164] ss:$8 sps:$4 sm:$0xff]   ;;  %v2783_v17 = vld [vmem:[#allocation8 + $0x54] ss:$8 sps:$4 sm:$0xff]  }
  0xd5   : > { %1224 = vmatpush2.bf16.msra.mxu0 %v2542_v18  ;;  %1267 = vmatpush2.bf16.msra.mxu1 %v2544_v21  ;;  %v2786_v18 = vld [vmem:[#allocation8 + $0x154] ss:$8 sps:$4 sm:$0xff]   ;;  %v2789_v21 = vld [vmem:[#allocation8 + $0x44] ss:$8 sps:$4 sm:$0xff]  }
  0xd6   : > { %1225 = vmatprep.subr.bf16.mxu0 %v2535_v22  ;;  %1268 = vmatprep.subr.bf16.mxu1 %v2537_v25  ;;  %v2792_v22 = vld [vmem:[#allocation8 + $0x144] ss:$8 sps:$4 sm:$0xff]   ;;  %v2798_v25 = vld [vmem:[#allocation8 + $0x134] ss:$8 sps:$4 sm:$0xff]  }
  0xd9   : > { %1226 = vmatpush2.bf16.msra.mxu0 %v2534_v26  ;;  %1269 = vmatpush2.bf16.msra.mxu1 %v2536_v29  ;;  %v2793_v26 = vld [vmem:[#allocation8 + $0x30] ss:$8 sps:$4 sm:$0xff]   ;;  %v2804_v29 = vld [vmem:[#allocation8 + $0x124] ss:$8 sps:$4 sm:$0xff]  }
  0xda   : > { %1227 = vmatprep.subr.bf16.mxu0 %v2527_v30  ;;  %1270 = vmatprep.subr.bf16.mxu1 %v2529_v33  ;;  %v2799_v30 = vld [vmem:[#allocation8 + $0x20] ss:$8 sps:$4 sm:$0xff]   ;;  %v2810_v33 = vld [vmem:[#allocation8 + $0x114] ss:$8 sps:$4 sm:$0xff]  }
  0xdd   : > { %1228 = vmatpush2.bf16.msra.mxu0 %v2526_v34  ;;  %1271 = vmatpush2.bf16.msra.mxu1 %v2528_v35  ;;  %v2805_v34 = vld [vmem:[#allocation8 + $0x10] ss:$8 sps:$4 sm:$0xff]  }
  0xde   : > { %1229 = vmatprep.subr.bf16.mxu0 %v2519_v36  ;;  %1272 = vmatprep.subr.bf16.mxu1 %v2521_v37  ;;  %v2808_v35 = vld [vmem:[#allocation8 + $0x110] ss:$8 sps:$4 sm:$0xff]   ;;  %v2813_v36 = vld [vmem:[#allocation8 + $0x4] ss:$8 sps:$4 sm:$0xff]  }
  0xdf   : > { %v2816_v37 = vld [vmem:[#allocation8 + $0x104] ss:$8 sps:$4 sm:$0xff]  }
  0xe1   : > { %1230 = vmatpush2.bf16.msra.mxu0 %v2518_v42  ;;  %1273 = vmatpush2.bf16.msra.mxu1 %v2520_v43  ;;  %v2817_v42 = vld [vmem:[#allocation8 + $0xf0] ss:$8 sps:$4 sm:$0xff]  }
  0xe2   : > { %1231 = vmatprep.subr.bf16.mxu0 %v2511_v44  ;;  %1274 = vmatprep.subr.bf16.mxu1 %v2513_v58  ;;  %v2820_v43 = vld [vmem:[#allocation8 + $0x1f0] ss:$8 sps:$4 sm:$0xff]   ;;  %v2825_v44 = vld [vmem:[#allocation8 + $0xe4] ss:$8 sps:$4 sm:$0xff]  }
  0xe3   : > { %v2828_v58 = vld [vmem:[#allocation8 + $0x1e4] ss:$8 sps:$4 sm:$0xff]  }
  0xe5   : > { %1232 = vmatpush2.bf16.msra.mxu0 %v2510_v49  ;;  %1275 = vmatpush2.bf16.msra.mxu1 %v2512_v50  ;;  %v2829_v49 = vld [vmem:[#allocation8 + $0xd0] ss:$8 sps:$4 sm:$0xff]  }
  0xe6   : > { %1233 = vmatprep.subr.bf16.mxu0 %v2503_v51  ;;  %1276 = vmatprep.subr.bf16.mxu1 %v2505_v52  ;;  %v2832_v50 = vld [vmem:[#allocation8 + $0x1d0] ss:$8 sps:$4 sm:$0xff]   ;;  %v2837_v51 = vld [vmem:[#allocation8 + $0xc4] ss:$8 sps:$4 sm:$0xff]  }
  0xe7   : > { %v2840_v52 = vld [vmem:[#allocation8 + $0x1c4] ss:$8 sps:$4 sm:$0xff]  }
  0xe9   : > { %1234 = vmatpush2.bf16.msra.mxu0 %v2502_v57  ;;  %1277 = vmatpush2.bf16.msra.mxu1 %v2504_v59  ;;  %v2841_v57 = vld [vmem:[#allocation8 + $0xb0] ss:$8 sps:$4 sm:$0xff]  }
  0xea   : > { %1235 = vmatprep.subr.bf16.mxu0 %v2495_v60  ;;  %1278 = vmatprep.subr.bf16.mxu1 %v2497_v61  ;;  %v2844_v59 = vld [vmem:[#allocation8 + $0x1b0] ss:$8 sps:$4 sm:$0xff]   ;;  %v2849_v60 = vld [vmem:[#allocation8 + $0xa4] ss:$8 sps:$4 sm:$0xff]  }
  0xeb   : > { %v2852_v61 = vld [vmem:[#allocation8 + $0x1a4] ss:$8 sps:$4 sm:$0xff]  }
  0xed   : > { %1236 = vmatpush2.bf16.msra.mxu0 %v2494_v2  ;;  %1279 = vmatpush2.bf16.msra.mxu1 %v2496_v3  ;;  %v2853_v2 = vld [vmem:[#allocation8 + $0x90] ss:$8 sps:$4 sm:$0xff]  }
  0xee   : > { %1237 = vmatprep.subr.bf16.mxu0 %v2487_v4  ;;  %1280 = vmatprep.subr.bf16.mxu1 %v2489_v5  ;;  %v2856_v3 = vld [vmem:[#allocation8 + $0x190] ss:$8 sps:$4 sm:$0xff]   ;;  %v2861_v4 = vld [vmem:[#allocation8 + $0x84] ss:$8 sps:$4 sm:$0xff]  }
  0xef   : > { %v2864_v5 = vld [vmem:[#allocation8 + $0x184] ss:$8 sps:$4 sm:$0xff]  }
  0xf1   : > { %1238 = vmatpush2.bf16.msra.mxu0 %v2486_v6  ;;  %1281 = vmatpush2.bf16.msra.mxu1 %v2488_v7  ;;  %v2859_v6 = vld [vmem:[#allocation8 + $0x80] ss:$8 sps:$4 sm:$0xff]  }
  0xf2   : > { %2097 = vmatprep.subr.bf16.mxu0 %v2771_v8  ;;  %2140 = vmatprep.subr.bf16.mxu1 %v2774_v9  ;;  %v2862_v7 = vld [vmem:[#allocation8 + $0x180] ss:$8 sps:$4 sm:$0xff]   ;;  %v2867_v8 = vld [vmem:[#allocation8 + $0x274] ss:$8 sps:$4 sm:$0xff]  }
  0xf3   : > { %v2870_v9 = vld [vmem:[#allocation8 + $0x374] ss:$8 sps:$4 sm:$0xff]  }
  0xf4   : > { %1240 = vmatmul.mubr.bf16.vlgmr.msra.gmra.mxu0 %v3357_v14  ;;  %1283 = vmatmul.mubr.bf16.vlgmr.msra.gmra.mxu1 %v3357_v14  ;;  %v2790_v14 = vld [vmem:[#allocation8 + $0x140] ss:$8 sps:$4 sm:$0xff]  }
  0xf5   : > { %2098 = vmatpush1.bf16.msra.mxu0 %v2769_v10  ;;  %2141 = vmatpush1.bf16.msra.mxu1 %v2772_v11  ;;  %v441_v10 = vlaneseq }
  0xf6   : > { %2099 = vmatprep.subr.bf16.mxu0 %v2777_v12  ;;  %2142 = vmatprep.subr.bf16.mxu1 %v2780_v13 }
  0xf7   : > { %v3365_v11 = vshrl.u32 %v441_v10, 7  ;;  %v2904_v10 = vld [vmem:[#allocation8 + $0x310] ss:$8 sps:$4 sm:$0xff]  }
  0xf9   : > { %2100 = vmatpush1.bf16.msra.mxu0 %v2775_v15  ;;  %2143 = vmatpush1.bf16.msra.mxu1 %v2778_v16  ;;  %v451_v12 = vsub.s32 2, %v3365_v11  ;;  %v447_v13 = vsub.s32 1, %v3365_v11  ;;  %v3369_v15 = vld [vmem:[#allocation7] sm:$0xff]  ;;  %v443_v16 = vsub.s32 0, %v3365_v11 }
  0xfa   : > { %2101 = vmatprep.subr.bf16.mxu0 %v2783_v17  ;;  %2144 = vmatprep.subr.bf16.mxu1 %v2786_v18  ;;  %v455_v17 = vsub.s32 3, %v3365_v11 }
  0xfd   : > { %2102 = vmatpush1.bf16.msra.mxu0 %v2781_v19  ;;  %2145 = vmatpush1.bf16.msra.mxu1 %v2784_v20  ;;  %v452_v19 = vrot.slane %v3369_v15, %v451_v12  ;;  %v2909_v12 = vld [vmem:[#allocation8 + $0x204] ss:$8 sps:$4 sm:$0xff]  }
  0xfe   : > { %2103 = vmatprep.subr.bf16.mxu0 %v2789_v21  ;;  %2146 = vmatprep.subr.bf16.mxu1 %v2792_v22  ;;  %v448_v21 = vrot.slane %v3369_v15, %v447_v13  ;;  %v444_v22 = vrot.slane %v3369_v15, %v443_v16 }
 0x101   : > { %2104 = vmatpush1.bf16.msra.mxu0 %v2787_v23  ;;  %2147 = vmatpush1.bf16.msra.mxu1 %v2790_v14  ;;  %v456_v14 = vrot.slane %v3369_v15, %v455_v17  ;;  %v2912_v17 = vld [vmem:[#allocation8 + $0x304] ss:$8 sps:$4 sm:$0xff]  }
 0x102   : > { %2105 = vmatprep.subr.bf16.mxu0 %v2795_v24  ;;  %2148 = vmatprep.subr.bf16.mxu1 %v2798_v25 }
 0x105   : > { %2106 = vmatpush1.bf16.msra.mxu0 %v2793_v26  ;;  %2149 = vmatpush1.bf16.msra.mxu1 %v2796_v27 }
 0x106   : > { %2107 = vmatprep.subr.bf16.mxu0 %v2801_v28  ;;  %2150 = vmatprep.subr.bf16.mxu1 %v2804_v29 }
 0x109   : > { %2108 = vmatpush1.bf16.msra.mxu0 %v2799_v30  ;;  %2151 = vmatpush1.bf16.msra.mxu1 %v2802_v31 }
 0x10a   : > { %2109 = vmatprep.subr.bf16.mxu0 %v2807_v32  ;;  %2152 = vmatprep.subr.bf16.mxu1 %v2810_v33 }
 0x10d   : > { %2110 = vmatpush1.bf16.msra.mxu0 %v2805_v34  ;;  %2153 = vmatpush1.bf16.msra.mxu1 %v2808_v35 }
 0x10e   : > { %2111 = vmatprep.subr.bf16.mxu0 %v2813_v36  ;;  %2154 = vmatprep.subr.bf16.mxu1 %v2816_v37 }
 0x111   : > { %2112 = vmatpush1.bf16.msra.mxu0 %v2811_v38  ;;  %2155 = vmatpush1.bf16.msra.mxu1 %v2814_v39 }
 0x112   : > { %2113 = vmatprep.subr.bf16.mxu0 %v2819_v40  ;;  %2156 = vmatprep.subr.bf16.mxu1 %v2822_v41 }
 0x115   : > { %2114 = vmatpush2.bf16.msra.mxu0 %v2817_v42  ;;  %2157 = vmatpush2.bf16.msra.mxu1 %v2820_v43 }
 0x116   : > { %2115 = vmatprep.subr.bf16.mxu0 %v2825_v44  ;;  %2158 = vmatprep.subr.bf16.mxu1 %v2828_v58 }
 0x119   : > { %2116 = vmatpush2.bf16.msra.mxu0 %v2823_v45  ;;  %2159 = vmatpush2.bf16.msra.mxu1 %v2826_v46  ;;  %v2865_v45 = vld [vmem:[#allocation8 + $0x270] ss:$8 sps:$4 sm:$0xff]  }
 0x11a   : > { %2117 = vmatprep.subr.bf16.mxu0 %v2831_v47  ;;  %2160 = vmatprep.subr.bf16.mxu1 %v2834_v48  ;;  %v2868_v48 = vld [vmem:[#allocation8 + $0x370] ss:$8 sps:$4 sm:$0xff]  }
 0x11d   : > { %2118 = vmatpush2.bf16.msra.mxu0 %v2829_v49  ;;  %2161 = vmatpush2.bf16.msra.mxu1 %v2832_v50  ;;  %v2873_v49 = vld [vmem:[#allocation8 + $0x264] ss:$8 sps:$4 sm:$0xff]  }
 0x11e   : > { %2119 = vmatprep.subr.bf16.mxu0 %v2837_v51  ;;  %2162 = vmatprep.subr.bf16.mxu1 %v2840_v52  ;;  %v2876_v51 = vld [vmem:[#allocation8 + $0x364] ss:$8 sps:$4 sm:$0xff]   ;;  %v2871_v52 = vld [vmem:[#allocation8 + $0x260] ss:$8 sps:$4 sm:$0xff]  }
 0x121   : > { %2120 = vmatpush2.bf16.msra.mxu0 %v2835_v53  ;;  %2163 = vmatpush2.bf16.msra.mxu1 %v2838_v54  ;;  %v2874_v53 = vld [vmem:[#allocation8 + $0x360] ss:$8 sps:$4 sm:$0xff]   ;;  %v2879_v54 = vld [vmem:[#allocation8 + $0x254] ss:$8 sps:$4 sm:$0xff]  }
 0x122   : > { %2121 = vmatprep.subr.bf16.mxu0 %v2843_v55  ;;  %2164 = vmatprep.subr.bf16.mxu1 %v2846_v56  ;;  %v2882_v55 = vld [vmem:[#allocation8 + $0x354] ss:$8 sps:$4 sm:$0xff]   ;;  %v2877_v56 = vld [vmem:[#allocation8 + $0x250] ss:$8 sps:$4 sm:$0xff]  }
 0x125   : > { %2122 = vmatpush2.bf16.msra.mxu0 %v2841_v57  ;;  %2165 = vmatpush2.bf16.msra.mxu1 %v2844_v59  ;;  %v2880_v57 = vld [vmem:[#allocation8 + $0x350] ss:$8 sps:$4 sm:$0xff]   ;;  %v2885_v59 = vld [vmem:[#allocation8 + $0x244] ss:$8 sps:$4 sm:$0xff]  }
 0x126   : > { %2123 = vmatprep.subr.bf16.mxu0 %v2849_v60  ;;  %2166 = vmatprep.subr.bf16.mxu1 %v2852_v61  ;;  %v2888_v60 = vld [vmem:[#allocation8 + $0x344] ss:$8 sps:$4 sm:$0xff]   ;;  %v2883_v61 = vld [vmem:[#allocation8 + $0x240] ss:$8 sps:$4 sm:$0xff]  }
 0x129   : > { %2124 = vmatpush2.bf16.msra.mxu0 %v2847_v62  ;;  %2167 = vmatpush2.bf16.msra.mxu1 %v2850_v63  ;;  %v2886_v62 = vld [vmem:[#allocation8 + $0x340] ss:$8 sps:$4 sm:$0xff]   ;;  %v2891_v63 = vld [vmem:[#allocation8 + $0x234] ss:$8 sps:$4 sm:$0xff]  }
 0x12a   : > { %2125 = vmatprep.subr.bf16.mxu0 %v2855_v0  ;;  %2168 = vmatprep.subr.bf16.mxu1 %v2858_v1  ;;  %v2894_v0 = vld [vmem:[#allocation8 + $0x334] ss:$8 sps:$4 sm:$0xff]   ;;  %v2889_v1 = vld [vmem:[#allocation8 + $0x230] ss:$8 sps:$4 sm:$0xff]  }
 0x12d   : > { %2126 = vmatpush2.bf16.msra.mxu0 %v2853_v2  ;;  %2169 = vmatpush2.bf16.msra.mxu1 %v2856_v3  ;;  %v2892_v2 = vld [vmem:[#allocation8 + $0x330] ss:$8 sps:$4 sm:$0xff]   ;;  %v2897_v3 = vld [vmem:[#allocation8 + $0x224] ss:$8 sps:$4 sm:$0xff]  }
 0x12e   : > { %2127 = vmatprep.subr.bf16.mxu0 %v2861_v4  ;;  %2170 = vmatprep.subr.bf16.mxu1 %v2864_v5  ;;  %v2900_v4 = vld [vmem:[#allocation8 + $0x324] ss:$8 sps:$4 sm:$0xff]   ;;  %v2895_v5 = vld [vmem:[#allocation8 + $0x220] ss:$8 sps:$4 sm:$0xff]  }
 0x131   : > { %2128 = vmatpush2.bf16.msra.mxu0 %v2859_v6  ;;  %2171 = vmatpush2.bf16.msra.mxu1 %v2862_v7  ;;  %v2898_v6 = vld [vmem:[#allocation8 + $0x320] ss:$8 sps:$4 sm:$0xff]   ;;  %v2903_v7 = vld [vmem:[#allocation8 + $0x214] ss:$8 sps:$4 sm:$0xff]  }
 0x132   : > { %2183 = vmatprep.subr.bf16.mxu0 %v2867_v8  ;;  %2226 = vmatprep.subr.bf16.mxu1 %v2870_v9  ;;  %v2906_v8 = vld [vmem:[#allocation8 + $0x314] ss:$8 sps:$4 sm:$0xff]   ;;  %v2901_v9 = vld [vmem:[#allocation8 + $0x210] ss:$8 sps:$4 sm:$0xff]  }
 0x174   : > { %v1155_v18 = vpop.f32.mrf.mxu0  ;;  %v1198_v20 = vpop.f32.mrf.mxu1 }
 0x175   : > { %v1199_v26 = vadd.f32 %v1198_v20, %v452_v19  ;;  %v1156_v30 = vadd.f32 %v1155_v18, %v444_v22  ;;  %v2907_v18 = vld [vmem:[#allocation8 + $0x200] ss:$8 sps:$4 sm:$0xff]   ;;  %v2915_v20 = vld [vmem:[#allocation8 + $0x2f4] ss:$8 sps:$4 sm:$0xff]  }
 0x176   : > { %v1157_v23 = vpop.f32.mrf.mxu0  ;;  %v1200_v24 = vpop.f32.mrf.mxu1 }
 0x177   : > { %v1158_v27 = vadd.f32 %v1157_v23, %v448_v21  ;;  %v1201_v31 = vadd.f32 %v1200_v24, %v456_v14  ;;  %v1295_v38 = vmax.f32 %v1199_v26, 0.0  ;;  %v1293_v42 = vmax.f32 %v1156_v30, 0.0  ;;  %v2916_v23 = vld [vmem:[#allocation8 + $0x3f0] ss:$8 sps:$4 sm:$0xff]   ;;  %v2924_v24 = vld [vmem:[#allocation8 + $0x3e4] ss:$8 sps:$4 sm:$0xff]  }
 0x178   : > { %v1159_v25 = vpop.f32.mrf.mxu0  ;;  %v1202_v29 = vpop.f32.mrf.mxu1  ;;  %v2922_v26 = vld [vmem:[#allocation8 + $0x3e0] ss:$8 sps:$4 sm:$0xff]   ;;  %v2928_v30 = vld [vmem:[#allocation8 + $0x3d0] ss:$8 sps:$4 sm:$0xff]  }
 0x179   : > { %v1160_v28 = vadd.f32 %v1159_v25, %v444_v22  ;;  %v1203_v32 = vadd.f32 %v1202_v29, %v452_v19  ;;  %v1294_v39 = vmax.f32 %v1158_v27, 0.0  ;;  %v1296_v43 = vmax.f32 %v1201_v31, 0.0  ;;  %v2910_v19 = vld [vmem:[#allocation8 + $0x300] ss:$8 sps:$4 sm:$0xff]   ;;  %v2913_v22 = vld [vmem:[#allocation8 + $0x2f0] ss:$8 sps:$4 sm:$0xff]  }
 0x17a   : > { %v1161_v33 = vpop.f32.mrf.mxu0  ;;  %v1204_v35 = vpop.f32.mrf.mxu1  ;;  %v2919_v25 = vld [vmem:[#allocation8 + $0x2e0] ss:$8 sps:$4 sm:$0xff]   ;;  %v2927_v27 = vld [vmem:[#allocation8 + $0x2d4] ss:$8 sps:$4 sm:$0xff]   ;;  %v2925_v29 = vld [vmem:[#allocation8 + $0x2d0] ss:$8 sps:$4 sm:$0xff]  }
 0x17b   : > { %v1162_v34 = vadd.f32 %v1161_v33, %v448_v21  ;;  %v1301_v36 = vmax.f32 %v1160_v28, 0.0  ;;  %v1205_v37 = vadd.f32 %v1204_v35, %v456_v14  ;;  %v1303_v40 = vmax.f32 %v1203_v32, 0.0  ;;  %v2918_v21 = vld [vmem:[#allocation8 + $0x3f4] ss:$8 sps:$4 sm:$0xff]   ;;  %v2921_v14 = vld [vmem:[#allocation8 + $0x2e4] ss:$8 sps:$4 sm:$0xff]  }
 0x17c   : > { %v2930_v28 = vld [vmem:[#allocation8 + $0x3d4] ss:$8 sps:$4 sm:$0xff]   ;;  %v2933_v31 = vld [vmem:[#allocation8 + $0x2c4] ss:$8 sps:$4 sm:$0xff]   ;;  %v2931_v33 = vld [vmem:[#allocation8 + $0x2c0] ss:$8 sps:$4 sm:$0xff]  }
 0x17d   : > { %v1302_v41 = vmax.f32 %v1162_v34, 0.0  ;;  %v1304_v44 = vmax.f32 %v1205_v37, 0.0  ;;  %v1309_v46 = vpack.c.bf16 %v1301_v36, %v1293_v42  ;;  %v1311_v50 = vpack.c.bf16 %v1303_v40, %v1295_v38  ;;  %v2936_v32 = vld [vmem:[#allocation8 + $0x3c4] ss:$8 sps:$4 sm:$0xff]   ;;  %v2934_v34 = vld [vmem:[#allocation8 + $0x3c0] ss:$8 sps:$4 sm:$0xff]  }
 0x17e   : > { %v2939_v35 = vld [vmem:[#allocation8 + $0x2b4] ss:$8 sps:$4 sm:$0xff]   ;;  %v2937_v37 = vld [vmem:[#allocation8 + $0x2b0] ss:$8 sps:$4 sm:$0xff]   ;;  %v463_v40 = vsub.s32 5, %v3365_v11  ;;  %v459_v42 = vsub.s32 4, %v3365_v11 }
 0x17f   : > { %v1310_v58 = vpack.c.bf16 %v1302_v41, %v1294_v39  ;;  %v1312_v47 = vpack.c.bf16 %v1304_v44, %v1296_v43  ;;  %v2942_v36 = vld [vmem:[#allocation8 + $0x3b4] ss:$8 sps:$4 sm:$0xff]   ;;  %v2940_v38 = vld [vmem:[#allocation8 + $0x3b0] ss:$8 sps:$4 sm:$0xff]   ;;  %v2945_v39 = vld [vmem:[#allocation8 + $0x2a4] ss:$8 sps:$4 sm:$0xff]  }
 0x180   : > { %v2948_v41 = vld [vmem:[#allocation8 + $0x3a4] ss:$8 sps:$4 sm:$0xff]   ;;  %v471_v43 = vsub.s32 7, %v3365_v11  ;;  %v467_v44 = vsub.s32 6, %v3365_v11 }
 0x181   : > { %2129 = vmatprep.mubr.bf16.mxu0 %v1310_v58  ;;  %2172 = vmatprep.mubr.bf16.mxu1 %v1312_v47  ;;  %v2943_v58 = vld [vmem:[#allocation8 + $0x2a0] ss:$8 sps:$4 sm:$0xff]   ;;  %v2951_v47 = vld [vmem:[#allocation8 + $0x294] ss:$8 sps:$4 sm:$0xff]  }
 0x182   : > { %2130 = vmatmul.mubr.bf16.vlgmr.msra.gmra.mxu0 %v1309_v46  ;;  %2173 = vmatmul.mubr.bf16.vlgmr.msra.gmra.mxu1 %v1311_v50  ;;  %v2946_v46 = vld [vmem:[#allocation8 + $0x3a0] ss:$8 sps:$4 sm:$0xff]   ;;  %v2954_v50 = vld [vmem:[#allocation8 + $0x394] ss:$8 sps:$4 sm:$0xff]  }
 0x183   : > { %2184 = vmatpush1.bf16.msra.mxu0 %v2865_v45  ;;  %2227 = vmatpush1.bf16.msra.mxu1 %v2868_v48 }
 0x184   : > { %2185 = vmatprep.subr.bf16.mxu0 %v2873_v49  ;;  %2228 = vmatprep.subr.bf16.mxu1 %v2876_v51  ;;  %v464_v49 = vrot.slane %v3369_v15, %v463_v40  ;;  %v460_v51 = vrot.slane %v3369_v15, %v459_v42 }
 0x187   : > { %2186 = vmatpush1.bf16.msra.mxu0 %v2871_v52  ;;  %2229 = vmatpush1.bf16.msra.mxu1 %v2874_v53  ;;  %v472_v53 = vrot.slane %v3369_v15, %v471_v43 }
 0x188   : > { %2187 = vmatprep.subr.bf16.mxu0 %v2879_v54  ;;  %2230 = vmatprep.subr.bf16.mxu1 %v2882_v55  ;;  %v468_v54 = vrot.slane %v3369_v15, %v467_v44 }
 0x18b   : > { %2188 = vmatpush1.bf16.msra.mxu0 %v2877_v56  ;;  %2231 = vmatpush1.bf16.msra.mxu1 %v2880_v57  ;;  %v2949_v56 = vld [vmem:[#allocation8 + $0x290] ss:$8 sps:$4 sm:$0xff]  }
 0x18c   : > { %2189 = vmatprep.subr.bf16.mxu0 %v2885_v59  ;;  %2232 = vmatprep.subr.bf16.mxu1 %v2888_v60  ;;  %v2952_v59 = vld [vmem:[#allocation8 + $0x390] ss:$8 sps:$4 sm:$0xff]   ;;  %v2957_v60 = vld [vmem:[#allocation8 + $0x284] ss:$8 sps:$4 sm:$0xff]  }
 0x18f   : > { %2190 = vmatpush1.bf16.msra.mxu0 %v2883_v61  ;;  %2233 = vmatpush1.bf16.msra.mxu1 %v2886_v62 }
 0x190   : > { %2191 = vmatprep.subr.bf16.mxu0 %v2891_v63  ;;  %2234 = vmatprep.subr.bf16.mxu1 %v2894_v0  ;;  %v2960_v0 = vld [vmem:[#allocation8 + $0x384] ss:$8 sps:$4 sm:$0xff]  }
 0x193   : > { %2192 = vmatpush1.bf16.msra.mxu0 %v2889_v1  ;;  %2235 = vmatpush1.bf16.msra.mxu1 %v2892_v2 }
 0x194   : > { %2193 = vmatprep.subr.bf16.mxu0 %v2897_v3  ;;  %2236 = vmatprep.subr.bf16.mxu1 %v2900_v4 }
 0x197   : > { %2194 = vmatpush1.bf16.msra.mxu0 %v2895_v5  ;;  %2237 = vmatpush1.bf16.msra.mxu1 %v2898_v6 }
 0x198   : > { %2195 = vmatprep.subr.bf16.mxu0 %v2903_v7  ;;  %2238 = vmatprep.subr.bf16.mxu1 %v2906_v8  ;;  %v2955_v7 = vld [vmem:[#allocation8 + $0x280] ss:$8 sps:$4 sm:$0xff]  }
 0x19b   : > { %2196 = vmatpush1.bf16.msra.mxu0 %v2901_v9  ;;  %2239 = vmatpush1.bf16.msra.mxu1 %v2904_v10  ;;  %v2958_v10 = vld [vmem:[#allocation8 + $0x380] ss:$8 sps:$4 sm:$0xff]  }
 0x19c   : > { %2197 = vmatprep.subr.bf16.mxu0 %v2909_v12  ;;  %2240 = vmatprep.subr.bf16.mxu1 %v2912_v17 }
 0x19f   : > { %2198 = vmatpush1.bf16.msra.mxu0 %v2907_v18  ;;  %2241 = vmatpush1.bf16.msra.mxu1 %v2910_v19 }
 0x1a0   : > { %2199 = vmatprep.subr.bf16.mxu0 %v2915_v20  ;;  %2242 = vmatprep.subr.bf16.mxu1 %v2918_v21 }
 0x1a3   : > { %2200 = vmatpush2.bf16.msra.mxu0 %v2913_v22  ;;  %2243 = vmatpush2.bf16.msra.mxu1 %v2916_v23 }
 0x1a4   : > { %2201 = vmatprep.subr.bf16.mxu0 %v2921_v14  ;;  %2244 = vmatprep.subr.bf16.mxu1 %v2924_v24 }
 0x1a7   : > { %2202 = vmatpush2.bf16.msra.mxu0 %v2919_v25  ;;  %2245 = vmatpush2.bf16.msra.mxu1 %v2922_v26 }
 0x1a8   : > { %2203 = vmatprep.subr.bf16.mxu0 %v2927_v27  ;;  %2246 = vmatprep.subr.bf16.mxu1 %v2930_v28  ;;  %v1445_v28 = vld [vmem:[%s3463_s4] sm:$0x3] }
 0x1ab   : > { %2204 = vmatpush2.bf16.msra.mxu0 %v2925_v29  ;;  %2247 = vmatpush2.bf16.msra.mxu1 %v2928_v30  ;;  %v1450_v30 = vrot.slane %v1445_v28, %v443_v16 }
 0x1ac   : > { %2205 = vmatprep.subr.bf16.mxu0 %v2933_v31  ;;  %2248 = vmatprep.subr.bf16.mxu1 %v2936_v32  ;;  %v1454_v32 = vrot.slane %v1445_v28, %v447_v13 }
 0x1af   : > { %2206 = vmatpush2.bf16.msra.mxu0 %v2931_v33  ;;  %2249 = vmatpush2.bf16.msra.mxu1 %v2934_v34 }
 0x1b0   : > { %2207 = vmatprep.subr.bf16.mxu0 %v2939_v35  ;;  %2250 = vmatprep.subr.bf16.mxu1 %v2942_v36 }
 0x1b3   : > { %2208 = vmatpush2.bf16.msra.mxu0 %v2937_v37  ;;  %2251 = vmatpush2.bf16.msra.mxu1 %v2940_v38 }
 0x1b4   : > { %v1241_v45 = vpop.f32.mrf.mxu0  ;;  %2209 = vmatprep.subr.bf16.mxu0 %v2945_v39  ;;  %v1284_v48 = vpop.f32.mrf.mxu1  ;;  %2252 = vmatprep.subr.bf16.mxu1 %v2948_v41 }
 0x1b5   : > { %v1242_v1 = vadd.f32 %v1241_v45, %v460_v51  ;;  %v1285_v5 = vadd.f32 %v1284_v48, %v468_v54 }
 0x1b6   : > { %v1243_v52 = vpop.f32.mrf.mxu0  ;;  %v1286_v55 = vpop.f32.mrf.mxu1 }
 0x1b7   : > { %2210 = vmatpush2.bf16.msra.mxu0 %v2943_v58  ;;  %2253 = vmatpush2.bf16.msra.mxu1 %v2946_v46  ;;  %v1244_v61 = vadd.f32 %v1243_v52, %v464_v49  ;;  %v1287_v2 = vadd.f32 %v1286_v55, %v472_v53  ;;  %v1297_v19 = vmax.f32 %v1242_v1, 0.0  ;;  %v1299_v22 = vmax.f32 %v1285_v5, 0.0 }
 0x1b8   : > { %v1245_v57 = vpop.f32.mrf.mxu0  ;;  %2211 = vmatprep.subr.bf16.mxu0 %v2951_v47  ;;  %v1288_v63 = vpop.f32.mrf.mxu1  ;;  %2254 = vmatprep.subr.bf16.mxu1 %v2954_v50 }
 0x1b9   : > { %v1246_v62 = vadd.f32 %v1245_v57, %v460_v51  ;;  %v1289_v3 = vadd.f32 %v1288_v63, %v468_v54  ;;  %v1298_v12 = vmax.f32 %v1244_v61, 0.0  ;;  %v1300_v20 = vmax.f32 %v1287_v2, 0.0 }
 0x1ba   : > { %v1247_v4 = vpop.f32.mrf.mxu0  ;;  %v1290_v15 = vpop.f32.mrf.mxu1 }
 0x1bb   : > { %v1248_v6 = vadd.f32 %v1247_v4, %v464_v49  ;;  %2212 = vmatpush2.bf16.msra.mxu0 %v2949_v56  ;;  %v1305_v8 = vmax.f32 %v1246_v62, 0.0  ;;  %v1291_v9 = vadd.f32 %v1290_v15, %v472_v53  ;;  %2255 = vmatpush2.bf16.msra.mxu1 %v2952_v59  ;;  %v1307_v17 = vmax.f32 %v1289_v3, 0.0 }
 0x1bc   : > { %2213 = vmatprep.subr.bf16.mxu0 %v2957_v60  ;;  %2256 = vmatprep.subr.bf16.mxu1 %v2960_v0 }
 0x1bd   : > { %v1306_v18 = vmax.f32 %v1248_v6, 0.0  ;;  %v1308_v21 = vmax.f32 %v1291_v9, 0.0  ;;  %v1313_v14 = vpack.c.bf16 %v1305_v8, %v1297_v19  ;;  %v1315_v25 = vpack.c.bf16 %v1307_v17, %v1299_v22 }
 0x1bf   : > { %v1314_v23 = vpack.c.bf16 %v1306_v18, %v1298_v12  ;;  %2214 = vmatpush2.bf16.msra.mxu0 %v2955_v7  ;;  %v1316_v24 = vpack.c.bf16 %v1308_v21, %v1300_v20  ;;  %2257 = vmatpush2.bf16.msra.mxu1 %v2958_v10 }
 0x1c1   : > { %2215 = vmatprep.mubr.bf16.mxu0 %v1314_v23  ;;  %2258 = vmatprep.mubr.bf16.mxu1 %v1316_v24 }
 0x1c2   : > { %2216 = vmatmul.mubr.bf16.vlgmr.msra.gmra.mxu0 %v1313_v14  ;;  %2259 = vmatmul.mubr.bf16.vlgmr.msra.gmra.mxu1 %v1315_v25 }
 0x242   : > { %v2131_v26 = vpop.f32.mrf.mxu0  ;;  %v2174_v27 = vpop.f32.mrf.mxu1 }
 0x243   : > { %v2132_v34 = vadd.f32 %v2131_v26, %v1450_v30 }
 0x244   : > { %v2133_v29 = vpop.f32.mrf.mxu0  ;;  %v2176_v31 = vpop.f32.mrf.mxu1 }
 0x245   : > { %v2134_v36 = vadd.f32 %v2133_v29, %v1454_v32  ;;  %v2175_v38 = vadd.f32 %v2174_v27, %v2132_v34 }
 0x246   : > { %v2135_v33 = vpop.f32.mrf.mxu0  ;;  %v2178_v35 = vpop.f32.mrf.mxu1 }
 0x247   : > { %v2136_v39 = vadd.f32 %v2135_v33, %v1450_v30  ;;  %v2177_v42 = vadd.f32 %v2176_v31, %v2134_v36 }
 0x248   : > { %v2137_v37 = vpop.f32.mrf.mxu0  ;;  %v2180_v40 = vpop.f32.mrf.mxu1 }
 0x249   : > { %v2138_v43 = vadd.f32 %v2137_v37, %v1454_v32  ;;  %v2179_v16 = vadd.f32 %v2178_v35, %v2136_v39 }
 0x24b   : > { %v2181_v48 = vadd.f32 %v2180_v40, %v2138_v43 }
 0x282   : > { %v2217_v41 = vpop.f32.mrf.mxu0  ;;  %v2260_v58 = vpop.f32.mrf.mxu1 }
 0x283   : > { %v2218_v44 = vadd.f32 %v2217_v41, %v2175_v38 }
 0x284   : > { %v2219_v45 = vpop.f32.mrf.mxu0  ;;  %v2262_v11 = vpop.f32.mrf.mxu1 }
 0x285   : > { %v2261_v46 = vadd.f32 %v2260_v58, %v2218_v44  ;;  %v2220_v47 = vadd.f32 %v2219_v45, %v2177_v42 }
 0x286   : > { %v2221_v13 = vpop.f32.mrf.mxu0  ;;  %v2264_v51 = vpop.f32.mrf.mxu1 }
 0x287   : > { %2269 = vst [vmem:[%s292_s10] sm:$0xff] %v2261_v46  ;;  %v2263_v49 = vadd.f32 %v2262_v11, %v2220_v47  ;;  %v2222_v50 = vadd.f32 %v2221_v13, %v2179_v16 }
 0x288   : > { %v2223_v52 = vpop.f32.mrf.mxu0  ;;  %v2266_v55 = vpop.f32.mrf.mxu1 }
 0x289   : > { %2270 = vst [vmem:[%s292_s10 + $0x8] sm:$0xff] %v2263_v49  ;;  %v2265_v53 = vadd.f32 %v2264_v51, %v2222_v50  ;;  %v2224_v54 = vadd.f32 %v2223_v52, %v2181_v48  ;;  %2280 = sbr.rel (!%p3478_p1) target bundleno = 681 (0x2a9), region = 60 }
 0x28b   : > { %2271 = vst [vmem:[%s292_s10 + $0x10] sm:$0xff] %v2265_v53  ;;  %v2267_v56 = vadd.f32 %v2266_v55, %v2224_v54 }
 0x28d   : > { %2272 = vst [vmem:[%s292_s10 + $0x18] sm:$0xff] %v2267_v56 }
 0x28e   : > { %s3487_s15 = smov (!%p2283_p6, %s2282_s15), 2 }
 0x28f   : > { %s3402_s9 = sshll.u32 %s3487_s15, 8 }
 0x290   : > { %s2288_s28 = ssub.s32 512, %s3402_s9 }
 0x291   : > { %2289 = vsyncadd %s2274_s8, %s2288_s28  ;;  %p2678_p11 = scmp.ne.s32.totalorder %s3402_s9, 0  ;;  %s2690_s11 = sshll.u32 %s3203_s22, 9 }
 0x292   : > { %s3412_s12 = scalar_lea.hbm %s3464_s5, %s2690_s11  ;;  %s2295_s16 = sshll.u32 %s292_s10, 4  ;;  %s3414_s16 = int_to_ptr.vmem [resolvable:$true] %s2295_s16 }
 0x293   : > { %s3065_s23 = scalar_lea.vmem %s3414_s16, %s3402_s9  ;;  %s3149_s25 = smov [#allocation10]  }
 0x294   : > { %p3066_p3 = scmp.ne.s32.totalorder %s3414_s16, %s3065_s23  ;;  %s3069_s26 = sshll.u32 %s3149_s25, 4  ;;  %s3070_s26 = int_to_ptr.vmem [resolvable:$false] %s3069_s26 }
 0x295   : > { %s3071_s22 = scalar_lea.vmem %s3070_s26, 1024  ;;  %p3072_p9 = scmp.lt.s32.totalorder %s3414_s16, %s3070_s26 }
 0x296   : > { %p3067_p0 = pnand %p3066_p3, %p2678_p11  ;;  %p3073_p8 = scmp.lt.s32.totalorder %s3071_s22, %s3065_s23 }
 0x298   : > { %p3068_p2 = pneg %p3067_p0  ;;  %p3074_p12 = por %p3073_p8, %p3072_p9 }
 0x29a   : > { %p3075_p5 = pnand %p3074_p12, %p3068_p2 }
 0x29c   : > { %3078 = shalt.err (!%p3075_p5)
}
 0x29d   : > { %s3079_s29 = scalar_lea.hbm %s3412_s12, %s3402_s9  ;;  %s3083_s14 = scalar_lea.hbm %s3464_s5, 768 }
 0x29e   : > { %p3080_p13 = scmp.ne.s32.totalorder %s3412_s12, %s3079_s29  ;;  %p3084_p1 = scmp.lt.s32.totalorder %s3412_s12, %s3464_s5 }
 0x29f   : > { %p3085_p6 = scmp.lt.s32.totalorder %s3083_s14, %s3079_s29 }
 0x2a0   : > { %p3081_p4 = pnand %p3080_p13, %p2678_p11 }
 0x2a1   : > { %p3086_p3 = por %p3085_p6, %p3084_p1 }
 0x2a2   : > { %p3082_p10 = pneg %p3081_p4 }
 0x2a4   : > { %p3087_p0 = pnand %p3086_p3, %p3082_p10 }
 0x2a6   : > { %3090 = shalt.err (!%p3087_p0)
}
 0x2a7   : > { %s3150_s11 = smov 256   ;;  %s3151_s30 = smov 16  }
 0x2a8   : > { %2301 = dma.vmem_to_hbm [thread:$0]  (%p2678_p11), %s3414_s16, %s3402_s9, %s3412_s12, %s2274_s8, %s3150_s11, %s3150_s11, %s3151_s30  }
 0x2a9 PF: > { %s2310_s13 = sand.u32 1, %s3125_s18   ;;  %p3479_p2 = scmp.ne.s32.totalorder %s3470_s6, 0 }
 0x2aa   : > { %s2311_s23 = scalar_lea.sflag [#allocation4], %s2310_s13 }
 0x2ab   : > { %p2716_p9 = pnand %p2402_p7, %p3479_p2 }
 0x2ad   : > { %p2717_p8 = pneg %p2716_p9 }
 0x2af   : > { %3120 = dma.done.wait (%p2717_p8), %s2311_s23, 512  }
 0x2b0   : > { %3122 = vsyncadd (%p2717_p8), %s2311_s23, 4294966784  ;;  %p20_p12 = scmp.ge.s32.totalorder %s3207_s24, 4   ;;  %s3480_s18 = smov %s3129_s19 }
 0x2b1   : > { %s3481_s19 = smov %s3133_s20  ;;  %s3482_s20 = smov %s3219_s27 }
 0x2b2   : > { %s3483_s21 = smov %s3207_s24  ;;  %22 = sbr.rel (!%p20_p12) target bundleno = 7 (0x7), region = 97 }
 0x2b7   :  { %2316 = vsyncpa [#allocation3], 1 }
 0x2b8   :  { %2318 = vsyncpa [#allocation3 + $0x1], 1 }
 0x2b9   :  { %2319 = vsyncpa [#allocation6], 1 }
 0x2ba   :  { %2320 = vsyncpa [#allocation9], 1 }
 0x2bb   :  { %2321 = vsyncpa [#allocation4], 1 }
 0x2bc   :  { %2323 = vsyncpa [#allocation4 + $0x1], 1 }

</bundles_post_ra>
